<compile_context>
chip_gen: v7x
topology: tpu7x:2x2x1
jax: 0.10.0
libtpu: 0.0.40
codegen_flags: <defaults>
</compile_context>

<pallas_src>
import math
import numpy as np
import jax
import jax.numpy as jnp
from jax.experimental import pallas as pl
from jax.experimental.pallas import tpu as pltpu


def _bilinear_upsample_matrix(in_size, kernel_size=16, stride=8, padding=4):
    """1-D factor of the `fill_up_weights` bilinear ConvTranspose2d kernel.

    The 2-D kernel produced by fill_up_weights is exactly separable:
        w[i, j] = g(i) * g(j),  g(i) = 1 - |i/f - c|,  f = ceil(k/2), c = (2f-1-f%2)/(2f)
    so the depthwise ConvTranspose2d(stride=8, padding=4, k=16) equals  y = Uh @ x @ Uw^T
    per channel, with U[o, i] = g(o + padding - stride*i) when that index is valid.
    All entries are multiples of 1/256 with <= 8 significant bits -> exact in bfloat16.
    """
    f = math.ceil(kernel_size / 2)
    c = (2 * f - 1 - f % 2) / (2.0 * f)
    g = np.array([1.0 - abs(i / f - c) for i in range(kernel_size)], dtype=np.float64)
    out_size = (in_size - 1) * stride - 2 * padding + kernel_size
    U = np.zeros((out_size, in_size), dtype=np.float32)
    for o in range(out_size):
        for i in range(in_size):
            kk = o + padding - stride * i
            if 0 <= kk < kernel_size:
                U[o, i] = g[kk]
    return U


def _drnseg_kernel(x_ref, w_ref, b_ref, uwt_ref, uh_ref, logsm_ref, seg_ref, s3_ref):
    # x_ref    : (1, C, H*W)    base features for this image (f32, lane-dense)
    # w_ref    : (K, C)         seg 1x1-conv weight (f32)
    # b_ref    : (K, 1)         seg bias (f32)
    # uwt_ref  : (W, OW)        bilinear width-upsample matrix, transposed (bf16)
    # uh_ref   : (T, H)         rows of the bilinear height-upsample matrix for this OH tile (bf16)
    # logsm_ref: (1, K, T, OW)  log_softmax(up(seg(x))) rows for this OH tile
    # seg_ref  : (1, K, H*W)    seg(x) (f32, lane-dense), written once per image (tile 0)
    # s3_ref   : (K, H, W)      bf16 scratch: seg(x) reshaped once per image, reused by every tile
    K = w_ref.shape[0]
    _, H, W = s3_ref.shape
    T = uh_ref.shape[0]
    OW = uwt_ref.shape[1]

    @pl.when(pl.program_id(1) == 0)
    def _():
        # 1x1 conv over channels: (K, C) @ (C, H*W) -> (K, H*W), plus bias.  One lane-dense store.
        s = jnp.dot(w_ref[...], x_ref[0], preferred_element_type=jnp.float32) + b_ref[...]
        seg_ref[0] = s.astype(seg_ref.dtype)
        # Cast to bf16 BEFORE the lane-changing (K, H*W) -> (K, H, W) relayout (halves its bytes).
        s3_ref[...] = s.astype(jnp.bfloat16).reshape(K, H, W)

    # Separable bilinear x8 upsample for this tile of output rows, all classes batched on the MXU
    # (bf16 operands, f32 accumulation; the bilinear factors are exact in bf16):
    #   height: (K, T, H) x (K, H, W) -> (K, T, W)   K-batched dot_general, no zero padding
    #   width : (K*T, W)  @ (W, OW)   -> (K*T, OW)
    uh_b = jnp.broadcast_to(uh_ref[...], (K, T, H))
    yh = jnp.einsum("koh,khw->kow", uh_b, s3_ref[...],
                    preferred_element_type=jnp.float32)                        # (K, T, W) f32
    y = jnp.dot(yh.reshape(K * T, W).astype(jnp.bfloat16), uwt_ref[...],
                preferred_element_type=jnp.float32).reshape(K, T, OW)          # (K, T, OW) f32

    # LogSoftmax over the class dim (nn.LogSoftmax() picks dim=1 on 4-D input), f32 math, one pass.
    m = jnp.max(y, axis=0)                                                     # (T, OW)
    se = jnp.sum(jnp.exp(y - m[None, :, :]), axis=0)                           # (T, OW)
    lse = m + jnp.log(se)
    logsm_ref[0] = (y - lse[None, :, :]).astype(logsm_ref.dtype)


def drnseg_forward(x, w_seg, b_seg, Uh, Uw, *, oh_tile=None, logsm_dtype=jnp.float32):
    """x: (N, C, H, W) base features. Returns (log_softmax(up(seg(x))), seg(x))."""
    N, C, H, W = x.shape
    K = w_seg.shape[0]
    OH, OW = Uh.shape[0], Uw.shape[0]
    HW = H * W

    # Pick an OH tile (multiple of 8 that divides OH; OH = 8*H so one always exists).
    if oh_tile is None:
        oh_tile = OH
        for cand in range(min(128, OH), 7, -8):
            if OH % cand == 0:
                oh_tile = cand
                break
    assert OH % oh_tile == 0 and oh_tile % 8 == 0, (OH, oh_tile)
    n_tiles = OH // oh_tile

    # Lane-dense layouts prepared outside the kernel (last dims H*W / OW -> unmasked streaming
    # stores and contiguous DMA; no in-kernel (C,H,W)->(C,H*W) relayout).
    x_flat = jnp.asarray(x, jnp.float32).reshape(N, C, HW)
    w2 = jnp.asarray(w_seg, jnp.float32)
    b2 = jnp.asarray(b_seg, jnp.float32).reshape(K, 1)
    UwT = jnp.asarray(np.asarray(Uw, dtype=np.float32).T, dtype=jnp.bfloat16)   # (W, OW)
    Uh_b = jnp.asarray(np.asarray(Uh, dtype=np.float32), dtype=jnp.bfloat16)    # (OH, H)

    lg_item = jnp.dtype(logsm_dtype).itemsize
    # VMEM budget: double-buffered blocks where the index varies, single where constant,
    # plus headroom for upsample / log-softmax intermediates.
    vmem_est = (2 * C * HW * 4                       # x (varies over n)
                + K * C * 4 + K * 4 + W * OW * 2     # single-buffered constants
                + 2 * oh_tile * H * 2                # Uh tile (varies over t)
                + 2 * K * oh_tile * OW * lg_item     # logsm output tile
                + 2 * K * HW * 4                     # seg output
                + K * H * W * 2                      # s3 scratch
                + 4 * K * oh_tile * OW * 4)          # intermediates headroom
    vmem_limit = int(min(max(2 * vmem_est, 32 * 1024 * 1024), 128 * 1024 * 1024))

    grid_spec = pltpu.PrefetchScalarGridSpec(
        num_scalar_prefetch=0,
        grid=(N, n_tiles),
        in_specs=[
            pl.BlockSpec((1, C, HW), lambda n, t: (n, 0, 0)),
            # Grid-invariant operands: single-buffered (never re-fetched across the grid).
            pl.BlockSpec((K, C), lambda n, t: (0, 0), pipeline_mode=pl.Buffered(1)),
            pl.BlockSpec((K, 1), lambda n, t: (0, 0), pipeline_mode=pl.Buffered(1)),
            pl.BlockSpec((W, OW), lambda n, t: (0, 0), pipeline_mode=pl.Buffered(1)),
            # Only the Uh rows needed for this OH tile.
            pl.BlockSpec((oh_tile, H), lambda n, t: (t, 0)),
        ],
        out_specs=[
            pl.BlockSpec((1, K, oh_tile, OW), lambda n, t: (n, 0, t, 0)),
            pl.BlockSpec((1, K, HW), lambda n, t: (n, 0, 0)),
        ],
        scratch_shapes=[pltpu.VMEM((K, H, W), jnp.bfloat16)],
    )

    flops = int(N * (2 * K * C * HW                 # 1x1 conv (once per image)
                     + 2 * K * OH * H * W           # height upsample (batched over K)
                     + 2 * K * OH * W * OW          # width upsample
                     + 6 * K * OH * OW))            # log-softmax elementwise
    transcendentals = int(N * (K * OH * OW + OH * OW))
    bytes_accessed = int(N * C * HW * 4 + K * C * 4 + K * 4 + W * OW * 2 + N * OH * H * 2
                         + N * K * OH * OW * lg_item + N * K * HW * 4)

    fn = pl.pallas_call(
        _drnseg_kernel,
        out_shape=(
            jax.ShapeDtypeStruct((N, K, OH, OW), logsm_dtype),
            jax.ShapeDtypeStruct((N, K, HW), jnp.float32),
        ),
        grid_spec=grid_spec,
        compiler_params=pltpu.CompilerParams(
            # The OH-tile axis reuses the per-image seg(x) scratch -> "arbitrary"; batch parallel.
            dimension_semantics=("parallel", "arbitrary"),
            vmem_limit_bytes=vmem_limit,
        ),
        cost_estimate=pl.CostEstimate(flops=flops, transcendentals=transcendentals,
                                      bytes_accessed=bytes_accessed),
    )
    logsm, seg_flat = fn(x_flat, w2, b2, UwT, Uh_b)
    return logsm, seg_flat.reshape(N, K, H, W)


def _reference(x, w_seg, b_seg, Uh, Uw):
    hp = jax.lax.Precision.HIGHEST
    s = jnp.einsum("kc,nchw->nkhw", w_seg, x, precision=hp) + b_seg[None, :, None, None]
    t = jnp.einsum("oh,nkhw->nkow", Uh, s, precision=hp)
    y = jnp.einsum("pw,nkow->nkop", Uw, t, precision=hp)
    return jax.nn.log_softmax(y, axis=1), s


if __name__ == "__main__":
    # Small synthetic sizes: N=2, base out_dim C=32, H=W=16, classes K=8 -> upsampled 128x128.
    # oh_tile=64 exercises the multi-tile output path (2 OH tiles per image).
    N, C, H, W, K = 2, 32, 16, 16, 8

    key = jax.random.PRNGKey(0)
    kx, kw = jax.random.split(key)
    x = jax.random.normal(kx, (N, C, H, W), dtype=jnp.float32)

    # seg = nn.Conv2d(out_dim, classes, kernel_size=1, bias=True)
    #   weight ~ N(0, sqrt(2 / (1*1*classes))), bias = 0   (as in DRNSeg.__init__)
    std = math.sqrt(2.0 / K)
    w_seg = std * jax.random.normal(kw, (K, C), dtype=jnp.float32)   # (K, C, 1, 1) squeezed
    b_seg = jnp.zeros((K,), dtype=jnp.float32)

    # Fixed bilinear ConvTranspose2d(classes, classes, 16, stride=8, padding=4, groups=classes).
    Uh = _bilinear_upsample_matrix(H)    # (8H, H)
    Uw = _bilinear_upsample_matrix(W)    # (8W, W)

    logsm, seg = drnseg_forward(x, w_seg, b_seg, Uh, Uw, oh_tile=64)
    jax.block_until_ready((logsm, seg))

    ref_logsm, ref_seg = _reference(x, w_seg, b_seg, jnp.asarray(Uh), jnp.asarray(Uw))
    # seg path is f32 with default MXU precision; the upsample path uses bf16 operands with f32
    # accumulation, so the log-softmax tolerance is slightly looser.
    np.testing.assert_allclose(np.asarray(seg), np.asarray(ref_seg), rtol=2e-2, atol=2e-2)
    np.testing.assert_allclose(np.asarray(logsm), np.asarray(ref_logsm), rtol=5e-2, atol=5e-2)

    print("KERNEL_OK")
</pallas_src>

<mosaic_0001>
module attributes {stable_mosaic.version = 11 : i64} {
  func.func @_drnseg_kernel(%arg0: i32, %arg1: i32, %arg2: memref<1x32x256xf32, #tpu.memory_space<vmem>>, %arg3: memref<8x32xf32, #tpu.memory_space<vmem>>, %arg4: memref<8x1xf32, #tpu.memory_space<vmem>>, %arg5: memref<16x128xbf16, #tpu.memory_space<vmem>>, %arg6: memref<64x16xbf16, #tpu.memory_space<vmem>>, %arg7: memref<1x8x64x128xf32, #tpu.memory_space<vmem>>, %arg8: memref<1x8x256xf32, #tpu.memory_space<vmem>>, %arg9: memref<8x16x16xbf16, #tpu.memory_space<vmem>>) attributes {dimension_semantics = [#tpu.dimension_semantics<parallel>, #tpu.dimension_semantics<arbitrary>], iteration_bounds = array<i64: 2, 2>, scalar_prefetch = 0 : i64, scratch_operands = 1 : i64, tpu.core_type = #tpu.core_type<tc>, window_params = [{transform_indices = @transform_0, window_bounds = array<i64: 1, 32, 256>}, {pipeline_mode = #tpu.pipeline_mode<synchronous>, transform_indices = @transform_1, window_bounds = array<i64: 8, 32>}, {pipeline_mode = #tpu.pipeline_mode<synchronous>, transform_indices = @transform_2, window_bounds = array<i64: 8, 1>}, {pipeline_mode = #tpu.pipeline_mode<synchronous>, transform_indices = @transform_3, window_bounds = array<i64: 16, 128>}, {transform_indices = @transform_4, window_bounds = array<i64: 64, 16>}, {transform_indices = @transform_5, window_bounds = array<i64: 1, 8, 64, 128>}, {transform_indices = @transform_6, window_bounds = array<i64: 1, 8, 256>}]} {
    %c0_i32 = arith.constant 0 : i32
    %0 = arith.cmpi eq, %arg1, %c0_i32 : i32
    %1 = arith.extui %0 : i1 to i32
    %c0_i32_0 = arith.constant 0 : i32
    %2 = arith.cmpi ne, %1, %c0_i32_0 : i32
    scf.if %2 {
      %c0_14 = arith.constant 0 : index
      %c0_15 = arith.constant 0 : index
      %27 = vector.load %arg3[%c0_14, %c0_15] : memref<8x32xf32, #tpu.memory_space<vmem>>, vector<8x32xf32>
      %c0_16 = arith.constant 0 : index
      %c0_17 = arith.constant 0 : index
      %c0_18 = arith.constant 0 : index
      %28 = vector.load %arg2[%c0_16, %c0_17, %c0_18] : memref<1x32x256xf32, #tpu.memory_space<vmem>>, vector<1x32x256xf32>
      %29 = vector.shape_cast %28 : vector<1x32x256xf32> to vector<32x256xf32>
      %cst_19 = arith.constant dense<0.000000e+00> : vector<8x256xf32>
      %30 = tpu.matmul %27, %29, %cst_19 {dimension_numbers = #tpu.dot_dimension_numbers<[1], [0], [0], [1], [0, 0, 1, 1], [], []>} : vector<8x32xf32>, vector<32x256xf32>, vector<8x256xf32> -> vector<8x256xf32>
      %c0_20 = arith.constant 0 : index
      %c0_21 = arith.constant 0 : index
      %31 = vector.load %arg4[%c0_20, %c0_21] : memref<8x1xf32, #tpu.memory_space<vmem>>, vector<8x1xf32>
      %32 = vector.broadcast %31 : vector<8x1xf32> to vector<8x256xf32>
      %33 = arith.addf %30, %32 : vector<8x256xf32>
      %c0_22 = arith.constant 0 : index
      %c0_23 = arith.constant 0 : index
      %c0_24 = arith.constant 0 : index
      %34 = vector.load %arg8[%c0_22, %c0_23, %c0_24] : memref<1x8x256xf32, #tpu.memory_space<vmem>>, vector<1x8x256xf32>
      %35 = vector.shape_cast %34 : vector<1x8x256xf32> to vector<8x256xf32>
      %36 = vector.shape_cast %33 : vector<8x256xf32> to vector<1x8x256xf32>
      tpu.vector_store %arg8[%c0_22, %c0_23, %c0_24], %36 {strides = array<i32>} : memref<1x8x256xf32, #tpu.memory_space<vmem>>, vector<1x8x256xf32>,
      %37 = arith.truncf %33 : vector<8x256xf32> to vector<8x256xbf16>
      %38 = vector.shape_cast %37 : vector<8x256xbf16> to vector<8x16x16xbf16>
      %c0_25 = arith.constant 0 : index
      %c0_26 = arith.constant 0 : index
      %c0_27 = arith.constant 0 : index
      %39 = vector.load %arg9[%c0_25, %c0_26, %c0_27] : memref<8x16x16xbf16, #tpu.memory_space<vmem>>, vector<8x16x16xbf16>
      tpu.vector_store %arg9[%c0_25, %c0_26, %c0_27], %38 {strides = array<i32>} : memref<8x16x16xbf16, #tpu.memory_space<vmem>>, vector<8x16x16xbf16>,
    } else {
    }
    %c0 = arith.constant 0 : index
    %c0_1 = arith.constant 0 : index
    %3 = vector.load %arg6[%c0, %c0_1] : memref<64x16xbf16, #tpu.memory_space<vmem>>, vector<64x16xbf16>
    %4 = vector.shape_cast %3 : vector<64x16xbf16> to vector<1x64x16xbf16>
    %5 = vector.broadcast %4 : vector<1x64x16xbf16> to vector<8x64x16xbf16>
    %c0_2 = arith.constant 0 : index
    %c0_3 = arith.constant 0 : index
    %c0_4 = arith.constant 0 : index
    %6 = vector.load %arg9[%c0_2, %c0_3, %c0_4] : memref<8x16x16xbf16, #tpu.memory_space<vmem>>, vector<8x16x16xbf16>
    "tpu.trace_start"() <{level = 10 : i32, message = "koh,khw->kow"}> : () -> ()
    %cst = arith.constant dense<0.000000e+00> : vector<8x64x16xf32>
    %7 = tpu.matmul %5, %6, %cst {dimension_numbers = #tpu.dot_dimension_numbers<[2], [1], [1], [2], [0, 0, 0, 1, 1, 2], [0], [0]>} : vector<8x64x16xbf16>, vector<8x16x16xbf16>, vector<8x64x16xf32> -> vector<8x64x16xf32>
    "tpu.trace_stop"() : () -> ()
    %8 = vector.shape_cast %7 : vector<8x64x16xf32> to vector<512x16xf32>
    %9 = arith.truncf %8 : vector<512x16xf32> to vector<512x16xbf16>
    %c0_5 = arith.constant 0 : index
    %c0_6 = arith.constant 0 : index
    %10 = vector.load %arg5[%c0_5, %c0_6] : memref<16x128xbf16, #tpu.memory_space<vmem>>, vector<16x128xbf16>
    %cst_7 = arith.constant dense<0.000000e+00> : vector<512x128xf32>
    %11 = tpu.matmul %9, %10, %cst_7 {dimension_numbers = #tpu.dot_dimension_numbers<[1], [0], [0], [1], [0, 0, 1, 1], [], []>} : vector<512x16xbf16>, vector<16x128xbf16>, vector<512x128xf32> -> vector<512x128xf32>
    %12 = vector.shape_cast %11 : vector<512x128xf32> to vector<8x64x128xf32>
    %cst_8 = arith.constant dense<0xFF800000> : vector<64x128xf32>
    %13 = vector.multi_reduction <maximumf>, %12, %cst_8 [0] : vector<8x64x128xf32> to vector<64x128xf32>
    %14 = vector.shape_cast %13 : vector<64x128xf32> to vector<1x64x128xf32>
    %15 = vector.broadcast %14 : vector<1x64x128xf32> to vector<8x64x128xf32>
    %16 = arith.subf %12, %15 : vector<8x64x128xf32>
    %17 = math.exp %16 : vector<8x64x128xf32>
    %cst_9 = arith.constant dense<0.000000e+00> : vector<64x128xf32>
    %18 = vector.multi_reduction <add>, %17, %cst_9 [0] : vector<8x64x128xf32> to vector<64x128xf32>
    %19 = math.log %18 : vector<64x128xf32>
    %20 = arith.addf %13, %19 : vector<64x128xf32>
    %21 = vector.shape_cast %20 : vector<64x128xf32> to vector<1x64x128xf32>
    %22 = vector.broadcast %21 : vector<1x64x128xf32> to vector<8x64x128xf32>
    %23 = arith.subf %12, %22 : vector<8x64x128xf32>
    %c0_10 = arith.constant 0 : index
    %c0_11 = arith.constant 0 : index
    %c0_12 = arith.constant 0 : index
    %c0_13 = arith.constant 0 : index
    %24 = vector.load %arg7[%c0_10, %c0_11, %c0_12, %c0_13] : memref<1x8x64x128xf32, #tpu.memory_space<vmem>>, vector<1x8x64x128xf32>
    %25 = vector.shape_cast %24 : vector<1x8x64x128xf32> to vector<8x64x128xf32>
    %26 = vector.shape_cast %23 : vector<8x64x128xf32> to vector<1x8x64x128xf32>
    tpu.vector_store %arg7[%c0_10, %c0_11, %c0_12, %c0_13], %26 {strides = array<i32>} : memref<1x8x64x128xf32, #tpu.memory_space<vmem>>, vector<1x8x64x128xf32>,
    return
  }
  func.func @transform_0(%arg0: i32, %arg1: i32) -> (i32, i32, i32) {
    %c0_i32 = arith.constant 0 : i32
    %c0_i32_0 = arith.constant 0 : i32
    %c0_i32_1 = arith.constant 0 : i32
    return %arg0, %c0_i32, %c0_i32_0 : i32, i32, i32
  }
  func.func @transform_1(%arg0: i32, %arg1: i32) -> (i32, i32) {
    %c0_i32 = arith.constant 0 : i32
    %c0_i32_0 = arith.constant 0 : i32
    %c0_i32_1 = arith.constant 0 : i32
    return %c0_i32, %c0_i32_0 : i32, i32
  }
  func.func @transform_2(%arg0: i32, %arg1: i32) -> (i32, i32) {
    %c0_i32 = arith.constant 0 : i32
    %c0_i32_0 = arith.constant 0 : i32
    %c0_i32_1 = arith.constant 0 : i32
    return %c0_i32, %c0_i32_0 : i32, i32
  }
  func.func @transform_3(%arg0: i32, %arg1: i32) -> (i32, i32) {
    %c0_i32 = arith.constant 0 : i32
    %c0_i32_0 = arith.constant 0 : i32
    %c0_i32_1 = arith.constant 0 : i32
    return %c0_i32, %c0_i32_0 : i32, i32
  }
  func.func @transform_4(%arg0: i32, %arg1: i32) -> (i32, i32) {
    %c0_i32 = arith.constant 0 : i32
    %c0_i32_0 = arith.constant 0 : i32
    return %arg1, %c0_i32 : i32, i32
  }
  func.func @transform_5(%arg0: i32, %arg1: i32) -> (i32, i32, i32, i32) {
    %c0_i32 = arith.constant 0 : i32
    %c0_i32_0 = arith.constant 0 : i32
    %c0_i32_1 = arith.constant 0 : i32
    return %arg0, %c0_i32, %arg1, %c0_i32_0 : i32, i32, i32, i32
  }
  func.func @transform_6(%arg0: i32, %arg1: i32) -> (i32, i32, i32) {
    %c0_i32 = arith.constant 0 : i32
    %c0_i32_0 = arith.constant 0 : i32
    %c0_i32_1 = arith.constant 0 : i32
    return %arg0, %c0_i32, %c0_i32_0 : i32, i32, i32
  }
}

</mosaic_0001>

<bundles_post_ra>
// kernel: tpu_custom_call.1
= control target key start
LH: loop header
LB: loop body
LE: loop exit
PB: predicated region body
PF: predicated region fallthrough
CT: control target
= control target key end

     0   :  { %s4031_s0 = inlined_call_operand.hbm [shape: f32[2,32,256], index: 0, kind: input, shape index: {}]   ;;  %s4032_s1 = inlined_call_operand.vmem [shape: f32[8,32], index: 1, kind: input, shape index: {}]   ;;  %s4033_s2 = inlined_call_operand.vmem [shape: f32[8,1], index: 2, kind: input, shape index: {}]   ;;  %s4034_s3 = inlined_call_operand.vmem [shape: bf16[16,128], index: 3, kind: input, shape index: {}]   ;;  %s4035_s4 = inlined_call_operand.vmem [shape: bf16[128,16], index: 4, kind: input, shape index: {}]   ;;  %s4036_s5 = inlined_call_operand.hbm [shape: f32[2,8,128,128], index: 5, kind: output, shape index: {0}]   ;;  %s4037_s6 = inlined_call_operand.hbm [shape: f32[2,8,256], index: 6, kind: output, shape index: {1}]  }
   0x1   :  { %4102 = sst [smem:[#allocation65_spill]] %s4031_s0 }
   0x2   :  { %4103 = sst [smem:[#allocation66_spill]] %s4032_s1 }
   0x3   :  { %4104 = sst [smem:[#allocation67_spill]] %s4033_s2 }
   0x4   :  { %12 = vsyncpa [#allocation4], 0 }
   0x5   :  { %14 = vsyncpa [#allocation4 + $0x1], 0 }
   0x6   :  { %15 = vsyncpa [#allocation5], 0 }
   0x7   :  { %17 = vsyncpa [#allocation5 + $0x1], 0 }
   0x8   :  { %18 = vsyncpa [#allocation8], 0 }
   0x9   :  { %20 = vsyncpa [#allocation8 + $0x1], 0  ;;  %s3103_s21 = smov 0   ;;  %s3105_s22 = smov 0  }
   0xa   :  { %s3107_s23 = smov 0   ;;  %s3109_s24 = smov 0  }
   0xb   :  { %s3111_s25 = smov 0   ;;  %s3113_s26 = smov 0  }
   0xc   :  { %s3115_s27 = smov 0   ;;  %s3117_s28 = smov 0  }
   0xd   :  { %s3119_s29 = smov 0   ;;  %s3121_s30 = smov 0  }
   0xe   :  { %s3123_s7 = smov 0  }
   0xf LB: > { %4105 = sst [smem:[#allocation14_spill]] %s3013_s23  ;;  %s2283_s8 = sadd.s32 4294967295, %s3045_s7   ;;  %s3045_s7 = sphi %s3123_s7, %s26_s7   ;;  %s3041_s30 = sphi %s3121_s30, %s4241_s30   ;;  %s3037_s29 = sphi %s3119_s29, %s4240_s29   ;;  %s3033_s28 = sphi %s3117_s28, %s4239_s28   ;;  %s3029_s27 = sphi %s3115_s27, %s4238_s27   ;;  %s3025_s26 = sphi %s3113_s26, %s4246_s26   ;;  %s3021_s25 = sphi %s3111_s25, %s4245_s25   ;;  %s3017_s24 = sphi %s3109_s24, %s4244_s24   ;;  %s3013_s23 = sphi %s3107_s23, %s4236_s23   ;;  %s3009_s22 = sphi %s3105_s22, %s4243_s22   ;;  %s3005_s21 = sphi %s3103_s21, %s4242_s21  }
  0x10   : > { %4106 = sst [smem:[#allocation15_spill]] %s3037_s29  ;;  %s2284_s9 = sadd.s32 4294967294, %s3045_s7  }
  0x11   : > { %4107 = sst [smem:[#allocation16_spill]] %s3041_s30  ;;  %s35_s10 = sadd.s32 1, %s3037_s29 }
  0x12   : > { %s38_s11 = sadd.s32 1, %s3041_s30  ;;  %p36_p0 = scmp.ge.s32.totalorder %s35_s10, 2 }
  0x13   : > { %s45_s12 = sadd.s32 1, %s3025_s26  ;;  %p52_p1 = scmp.ne.s32.totalorder %s3025_s26, %s3021_s25 }
  0x14   : > { %p53_p2 = scmp.eq.s32.totalorder %s3045_s7, 0  ;;  %s4248_s10 = smov (%p36_p0, %s35_s10), 0 }
  0x15   : > { %4108 = sst [smem:[#allocation17_spill]] %s4248_s10  ;;  %s4250_s11 = smov (!%p36_p0, %s38_s11), %s3041_s30 }
  0x16   : > { %p3172_p3 = por %p53_p2, %p52_p1  ;;  %p58_p4 = scmp.ne.s32.totalorder %s3021_s25, %s3017_s24 }
  0x17   : > { %p40_p5 = scmp.ge.s32.totalorder %s4250_s11, 2  ;;  %p59_p6 = scmp.eq.s32.totalorder %s2283_s8, 0 }
  0x18   : > { %s158_s14 = ssub.s32 %s3037_s29, %s4248_s10  ;;  %s162_s15 = sadd.s32 1, %s3013_s23 }
  0x19   : > { %s4252_s11 = smov (%p40_p5, %s4250_s11), 0  ;;  %p3186_p7 = por %p59_p6, %p58_p4 }
  0x1a   : > { %4110 = sst [smem:[#allocation18_spill]] %s4252_s11  ;;  %p172_p8 = scmp.ne.s32.totalorder %s3013_s23, %s3009_s22 }
  0x1b   : > { %s42_s17 = ssub.s32 %s3041_s30, %s4252_s11  ;;  %p173_p9 = scmp.eq.s32.totalorder %s2283_s8, 3 }
  0x1c   : > { %p43_p10 = scmp.eq.s32.totalorder %s42_s17, 0  ;;  %s159_s18 = sor.u32 %s158_s14, %s42_s17 }
  0x1d   : > { %p160_p11 = scmp.eq.s32.totalorder %s159_s18, 0  ;;  %p3194_p12 = por %p173_p9, %p172_p8 }
  0x1e   : > { %s3199_s20 = scalar_select %p43_p10, %s3025_s26, %s45_s12  }
  0x1f   : > { %s4112_s19 = scalar_select %p3194_p12, 1, 0 }
  0x20   : > { %4113 = sst [smem:[#allocation19_spill]] %s3199_s20  ;;  %p178_p13 = scmp.ne.s32.totalorder %s3009_s22, %s3005_s21 }
  0x21   : > { %s3202_s10 = scalar_select %p160_p11, %s3013_s23, %s162_s15  }
  0x22   : > { %p179_p0 = scmp.eq.s32.totalorder %s2284_s9, 3  ;;  %p3209_p2 = por %p173_p9, %p52_p1 }
  0x23   : > { %4114 = sst [smem:[#allocation20_spill]] %s3202_s10  ;;  %p2630_p8 = scmp.lt.s32.totalorder %s3045_s7, 4 }
  0x24   : > { %s4115_s11 = scalar_select %p3209_p2, 1, 0 }
  0x25   : > { %p3213_p5 = por %p179_p0, %p178_p13  ;;  %p3220_p6 = por %p179_p0, %p58_p4 }
  0x26   : > { %s234_s12 = sand.u32 1, %s3025_s26   ;;  %s2376_s17 = sshll.u32 %s3041_s30, 10 }
  0x27   : > { %s4116_s8 = scalar_select %p3213_p5, 1, 0 }
  0x28   : > { %s4117_s14 = scalar_select %p3220_p6, 1, 0 }
  0x29   : > { %s2287_s15 = sshll.u32 %s234_s12, 6  ;;  %s4118_s0 = sld [smem:[#allocation65_spill]] }
  0x2a   : > { %s238_s20 = scalar_lea.vmem [#allocation3], %s2287_s15  ;;  %p3236_p1 = pnand %p2630_p8, %p3172_p3 }
  0x2b   : > { %s245_s10 = sshll.u32 %s238_s20, 4  ;;  %s3241_s30 = scalar_lea.sflag [#allocation4], %s234_s12  ;;  %s3232_s10 = int_to_ptr.vmem [resolvable:$true] %s245_s10 }
  0x2c   : > { %p2891_p10 = pneg %p3236_p1 }
  0x2f   : > { %s3230_s29 = scalar_lea.hbm %s4118_s0, %s2376_s17  ;;  %s2894_s13 = scalar_lea.hbm %s4118_s0, 2048 }
  0x30   : > { %s2889_s17 = scalar_lea.hbm %s3230_s29, 1024  ;;  %p2895_p3 = scmp.lt.u32.totalorder %s3230_s29, %s4118_s0 }
  0x31   : > { %p2890_p9 = scmp.ne.s32.totalorder %s3230_s29, %s2889_s17  ;;  %p2896_p0 = scmp.lt.u32.totalorder %s2894_s13, %s2889_s17 }
  0x32   : > { %p2898_p4 = scmp.lt.u32.totalorder %s2889_s17, %s3230_s29 }
  0x33   : > { %p2892_p11 = pnand %p2891_p10, %p2890_p9  ;;  %p2897_p8 = por %p2896_p0, %p2895_p3 }
  0x35   : > { %p2893_p13 = pneg %p2892_p11  ;;  %p2899_p6 = por %p2898_p4, %p2897_p8 }
  0x37   : > { %p2900_p5 = pnand %p2899_p6, %p2893_p13 }
  0x39   : > { %2903 = shalt.err (!%p2900_p5)
}
  0x3a   : > { %s2904_s12 = scalar_lea.vmem %s3232_s10, 1024  ;;  %s3047_s20 = smov [#allocation3]  }
  0x3b   : > { %p2905_p9 = scmp.ne.s32.totalorder %s3232_s10, %s2904_s12  ;;  %s2909_s15 = sshll.u32 %s3047_s20, 4  ;;  %s2910_s15 = int_to_ptr.vmem [resolvable:$false] %s2909_s15 }
  0x3c   : > { %s2911_s18 = scalar_lea.vmem %s2910_s15, 2048  ;;  %p2912_p12 = scmp.lt.s32.totalorder %s3232_s10, %s2910_s15 }
  0x3d   : > { %p2907_p11 = pnand %p2905_p9, %p2891_p10  ;;  %p2913_p3 = scmp.lt.s32.totalorder %s2911_s18, %s2904_s12 }
  0x3f   : > { %p2908_p2 = pneg %p2907_p11  ;;  %p2914_p0 = por %p2913_p3, %p2912_p12 }
  0x41   : > { %p2915_p4 = pnand %p2914_p0, %p2908_p2 }
  0x43   : > { %2918 = shalt.err (!%p2915_p4)
}
  0x44   : > { %s3048_s17 = smov 256   ;;  %s3049_s13 = smov 16  }
  0x45   : > { %2622 = dma.hbm_to_vmem [thread:$0]  (!%p3236_p1), %s3230_s29, 1024, %s3232_s10, %s3241_s30, %s3048_s17, %s3048_s17, %s3049_s13  }
  0x46   : > { %p262_p5 = scmp.lt.s32.totalorder %s3045_s7, 5  ;;  %p4120_p6 = scmp.ge.s32.totalorder %s3045_s7, 1 }
  0x48   : > { %p263_p10 = pnand %p4120_p6, %p262_p5 }
  0x4a   : > { %266 = sbr.rel (%p263_p10) target bundleno = 1151 (0x47f), region = 40 }
  0x51   : > { %s3273_s9 = sand.u32 1, %s3021_s25  }
  0x52   : > { %s2291_s12 = sshll.u32 %s3273_s9, 6  ;;  %s269_s20 = scalar_lea.sflag [#allocation4], %s3273_s9 }
  0x53   : > { %s272_s15 = scalar_lea.vmem [#allocation3], %s2291_s12 }
  0x54   : > { %2992 = dma.done.wait (%p3186_p7), %s269_s20, 1024  }
  0x55   : > { %2994 = vsyncadd (%p3186_p7), %s269_s20, 4294966272  ;;  %s301_s23 = sand.u32 1, %s3009_s22   ;;  %s2293_s29 = sshll.u32 %s3273_s9, 4 }
  0x56   : > { %s2292_s30 = sshll.u32 %s301_s23, 9  ;;  %s3286_s10 = sshll.u32 %s3029_s27, 3 }
  0x57   : > { %p312_p12 = scmp.lt.s32.totalorder %s3286_s10, 15  ;;  %s3295_s20 = scalar_lea.vmem [#allocation6], %s2292_s30 }
  0x58   : > { %s3297_s0 = scalar_lea.vmem [#allocation7], %s2293_s29  ;;  %p2296_p7 = scmp.ne.s32.totalorder %s3029_s27, 0 }
  0x59   : > { %s313_s18 = scalar_select %p312_p12, %s3286_s10, 15 }
  0x5a   : > { %322 = sbr.rel (%p2296_p7) target bundleno = 473 (0x1d9), region = 48  ;;  %v325_v0 = vld [vmem:[%s272_s15 + $0x8] sm:$0xff] (!%p2296_p7)  ;;  %v327_v1 = vld [vmem:[%s272_s15 + $0x18] sm:$0xff] (!%p2296_p7)  ;;  %v324_v2 = vld [vmem:[%s272_s15] sm:$0xff] (!%p2296_p7)  ;;  %v3050_v7 = vmov (!%p2296_p7), 0.0   ;;  %v3051_v8 = vmov (!%p2296_p7), 0   ;;  %v465_v31 = vlaneseq (!%p2296_p7) }
  0x5b   : > { %s2295_s17 = sshll.u32 %s313_s18, 2  ;;  %v2597_v3 = vpack.c.bf16 (!%p2296_p7), %v327_v1, %v325_v0  ;;  %v326_v4 = vld [vmem:[%s272_s15 + $0x10] sm:$0xff] (!%p2296_p7)  ;;  %v329_v5 = vld [vmem:[%s272_s15 + $0x28] sm:$0xff] (!%p2296_p7)  ;;  %v331_v6 = vld [vmem:[%s272_s15 + $0x38] sm:$0xff] (!%p2296_p7)  ;;  %406 = vmatprep.mubr.f32.mxu0 (!%p2296_p7), %v3050_v7  ;;  %2739 = vset.pattern.permute.xlu0 (!%p2296_p7), %v3051_v8  ;;  %s4121_s2 = sld [smem:[#allocation67_spill]] (!%p2296_p7)  ;;  %vm338_vm0 = vcmask (!%p2296_p7), 261120  }
  0x5c   : > { %s3293_s16 = scalar_lea.vmem %s4035_s4, %s2295_s17  ;;  %v2599_v9 = vpack.c.bf16 (!%p2296_p7), %v326_v4, %v324_v2  ;;  %v2601_v10 = vpack.c.bf16 (!%p2296_p7), %v331_v6, %v329_v5  ;;  %v328_v11 = vld [vmem:[%s272_s15 + $0x20] sm:$0xff] (!%p2296_p7)  ;;  %v330_v12 = vld [vmem:[%s272_s15 + $0x30] sm:$0xff] (!%p2296_p7)  ;;  %s4122_s1 = sld [smem:[#allocation66_spill]] (!%p2296_p7)  ;;  %v3059_v29 = vmov (!%p2296_p7), 1983009808   ;;  %v466_v35 = vshrl.u32 (!%p2296_p7), %v465_v31, 7 }
  0x5d   : > { %2598 = vmatprep.subr.bf16.mxu0 (!%p2296_p7), %v2597_v3  ;;  %v2603_v14 = vpack.c.bf16 (!%p2296_p7), %v330_v12, %v328_v11  ;;  %s3052_s15 = smov (!%p2296_p7), 96   ;;  %s3053_s17 = smov (!%p2296_p7), 112   ;;  %v463_v30 = vunpack.c.l.s4 (!%p2296_p7), %v3059_v29  ;;  %v3060_v38 = vmov (!%p2296_p7), 1934713408   ;;  %vm629_vm1 = vcmask (!%p2296_p7), 130048  }
  0x5e   : > { %2600 = vmatpush1.bf16.msra.mxu0 (!%p2296_p7), %v2599_v9  ;;  %s3054_s13 = smov (!%p2296_p7), 80   ;;  %s3055_s12 = smov (!%p2296_p7), 64   ;;  %v496_v39 = vunpack.c.l.s4 (!%p2296_p7), %v3060_v38 }
  0x5f   : > { %2602 = vmatprep.subr.bf16.mxu0 (!%p2296_p7), %v2601_v10  ;;  %s3056_s29 = smov (!%p2296_p7), 48   ;;  %s3057_s27 = smov (!%p2296_p7), 32   ;;  %v464_v34 = vunpack.c.0.s8 (!%p2296_p7), %v463_v30 }
  0x60   : > { %s3058_s30 = smov (!%p2296_p7), 16   ;;  %v497_v47 = vunpack.c.0.s8 (!%p2296_p7), %v496_v39 }
  0x61   : > { %v332_v13 = vld [vmem:[%s4121_s2] sm:$0xff]  ;;  %v467_v41 = vsub.s32 %v464_v34, %v466_v35 }
  0x62   : > { %335 = vperm.xlu0 %2739, %v332_v13   ;;  %2604 = vmatpush1.bf16.msra.mxu0 %v2603_v14  ;;  %v323_v15 = vld [vmem:[%s4122_s1] sm:$0xff]  ;;  %v500_v58 = vsub.s32 %v497_v47, %v466_v35 }
  0x65   : > { %2297 = vmatmul.mubr.msk.f32.vlgmr.msra.gmra.mrb[0].mxu0 %vm338_vm0, %v323_v15 }
  0xe1   : > { %v336_v16 = vpop.permute.xlu0 %335 }
 0x138   : > { %v408_v17 = vpop.f32.mrb[0].mxu0 }
 0x139   : > { %v409_v18 = vadd.f32 %v408_v17, %v336_v16  ;;  %v410_v19 = vpop.f32.mrb[1].mxu0 }
 0x13a   : > { %v411_v20 = vadd.f32 %v410_v19, %v336_v16 }
 0x13b   : > { %413 = vst [vmem:[%s3297_s0] sm:$0xff] %v409_v18  ;;  %v415_v21 = vpack.c.bf16 %v409_v18, %v409_v18 }
 0x13c   : > { %414 = vst [vmem:[%s3297_s0 + $0x8] sm:$0xff] %v411_v20  ;;  %v416_v22 = vpack.c.bf16 %v411_v20, %v411_v20 }
 0x13d   : > { %421 = vrot.lane.b32.xlu1 %v415_v21, %s3052_s15  ;;  %418 = vrot.lane.b32.xlu0 %v415_v21, %s3053_s17 }
 0x141   : > { %424 = vrot.lane.b32.xlu1 %v415_v21, %s3054_s13  ;;  %427 = vrot.lane.b32.xlu0 %v415_v21, %s3055_s12 }
 0x145   : > { %430 = vrot.lane.b32.xlu1 %v415_v21, %s3056_s29  ;;  %433 = vrot.lane.b32.xlu0 %v415_v21, %s3057_s27 }
 0x149   : > { %436 = vrot.lane.b32.xlu1 %v415_v21, %s3058_s30  ;;  %440 = vrot.lane.b32.xlu0 %v416_v22, %s3053_s17 }
 0x14d   : > { %443 = vrot.lane.b32.xlu1 %v416_v22, %s3052_s15  ;;  %446 = vrot.lane.b32.xlu0 %v416_v22, %s3054_s13 }
 0x151   : > { %449 = vrot.lane.b32.xlu1 %v416_v22, %s3055_s12  ;;  %452 = vrot.lane.b32.xlu0 %v416_v22, %s3056_s29 }
 0x155   : > { %455 = vrot.lane.b32.xlu1 %v416_v22, %s3057_s27  ;;  %458 = vrot.lane.b32.xlu0 %v416_v22, %s3058_s30 }
 0x1af   : > { %v422_v23 = vpop.permute.xlu1 %421  ;;  %v419_v24 = vpop.permute.xlu0 %418 }
 0x1b3   : > { %v425_v25 = vpop.permute.xlu1 %424  ;;  %v428_v26 = vpop.permute.xlu0 %427 }
 0x1b4   : > { %v461_v42 = vcombine.low %v415_v21, %v428_v26 }
 0x1b6   : > { %v468_v51 = vrot.slane %v461_v42, %v467_v41 }
 0x1b7   : > { %v431_v27 = vpop.permute.xlu1 %430  ;;  %v434_v28 = vpop.permute.xlu0 %433 }
 0x1b8   : > { %v469_v40 = vcombine.low %v422_v23, %v434_v28  ;;  %v529_v46 = vcombine.low %v419_v24, %v431_v27 }
 0x1ba   : > { %v476_v48 = vrot.slane %v469_v40, %v467_v41  ;;  %v536_v57 = vrot.slane %v529_v46, %v467_v41 }
 0x1bb   : > { %v437_v32 = vpop.permute.xlu1 %436  ;;  %v441_v33 = vpop.permute.xlu0 %440 }
 0x1bc   : > { %v537_v43 = vcombine.low %v425_v25, %v437_v32  ;;  %v493_v59 = vcombine.low %v468_v51, %v476_v48  ;;  %v494_v60 = vcombine.high %v468_v51, %v476_v48 }
 0x1be   : > { %v544_v52 = vrot.slane %v537_v43, %v467_v41  ;;  %v501_v7 = vrot.slane %v493_v59, %v500_v58  ;;  %v508_v8 = vrot.slane %v494_v60, %v500_v58 }
 0x1bf   : > { %v444_v36 = vpop.permute.xlu1 %443  ;;  %v447_v37 = vpop.permute.xlu0 %446 }
 0x1c0   : > { %v561_v1 = vcombine.low %v536_v57, %v544_v52  ;;  %v562_v2 = vcombine.high %v536_v57, %v544_v52 }
 0x1c2   : > { %v569_v13 = vrot.slane %v561_v1, %v500_v58  ;;  %v576_v14 = vrot.slane %v562_v2, %v500_v58 }
 0x1c3   : > { %v450_v44 = vpop.permute.xlu1 %449  ;;  %v453_v45 = vpop.permute.xlu0 %452 }
 0x1c4   : > { %v477_v49 = vcombine.low %v416_v22, %v450_v44  ;;  %v545_v50 = vcombine.low %v441_v33, %v453_v45 }
 0x1c6   : > { %v484_v61 = vrot.slane %v477_v49, %v467_v41  ;;  %v552_v62 = vrot.slane %v545_v50, %v467_v41 }
 0x1c7   : > { %v456_v53 = vpop.permute.xlu1 %455  ;;  %v459_v54 = vpop.permute.xlu0 %458 }
 0x1c8   : > { %v485_v55 = vcombine.low %v444_v36, %v456_v53  ;;  %v553_v56 = vcombine.low %v447_v37, %v459_v54 }
 0x1ca   : > { %v492_v63 = vrot.slane %v485_v55, %v467_v41  ;;  %v560_v0 = vrot.slane %v553_v56, %v467_v41 }
 0x1cc   : > { %v509_v3 = vcombine.low %v484_v61, %v492_v63  ;;  %v510_v4 = vcombine.high %v484_v61, %v492_v63  ;;  %v577_v5 = vcombine.low %v552_v62, %v560_v0  ;;  %v578_v6 = vcombine.high %v552_v62, %v560_v0 }
 0x1ce   : > { %v517_v9 = vrot.slane %v509_v3, %v500_v58  ;;  %v524_v10 = vrot.slane %v510_v4, %v500_v58  ;;  %v585_v11 = vrot.slane %v577_v5, %v500_v58  ;;  %v592_v12 = vrot.slane %v578_v6, %v500_v58 }
 0x1d0   : > { %v525_v15 = vcombine.low %v501_v7, %v517_v9  ;;  %v526_v16 = vcombine.high %v501_v7, %v517_v9  ;;  %v527_v17 = vcombine.low %v508_v8, %v524_v10  ;;  %v528_v18 = vcombine.high %v508_v8, %v524_v10 }
 0x1d1   : > { %v593_v19 = vcombine.low %v569_v13, %v585_v11  ;;  %v594_v20 = vcombine.high %v569_v13, %v585_v11  ;;  %v595_v21 = vcombine.low %v576_v14, %v592_v12  ;;  %v596_v22 = vcombine.high %v576_v14, %v592_v12 }
 0x1d2   : > { %v601_v23 = vshrl.u32 %v525_v15, 16  ;;  %v609_v24 = vshrl.u32 %v526_v16, 16  ;;  %v617_v25 = vshrl.u32 %v527_v17, 16  ;;  %v625_v26 = vshrl.u32 %v528_v18, 16 }
 0x1d3   : > { %v599_v27 = vpack.i.b16 %v593_v19, %v525_v15  ;;  %v602_v28 = vshrl.u32 %v593_v19, 16  ;;  %v607_v29 = vpack.i.b16 %v594_v20, %v526_v16  ;;  %v610_v30 = vshrl.u32 %v594_v20, 16 }
 0x1d4   : > { %v615_v31 = vpack.i.b16 %v595_v21, %v527_v17  ;;  %v618_v32 = vshrl.u32 %v595_v21, 16  ;;  %v623_v33 = vpack.i.b16 %v596_v22, %v528_v18  ;;  %v626_v34 = vshrl.u32 %v596_v22, 16 }
 0x1d5   : > { %v603_v35 = vpack.i.b16 %v602_v28, %v601_v23  ;;  %v611_v36 = vpack.i.b16 %v610_v30, %v609_v24  ;;  %630 = vst.msk [vmem:[#allocation2] sm:$0xff] %vm629_vm1, %v599_v27  ;;  %632 = vst.msk [vmem:[#allocation2 + $0x10] sm:$0xff] %vm629_vm1, %v607_v29 }
 0x1d6   : > { %v619_v37 = vpack.i.b16 %v618_v32, %v617_v25  ;;  %v627_v38 = vpack.i.b16 %v626_v34, %v625_v26  ;;  %634 = vst.msk [vmem:[#allocation2 + $0x20] sm:$0xff] %vm629_vm1, %v615_v31  ;;  %636 = vst.msk [vmem:[#allocation2 + $0x30] sm:$0xff] %vm629_vm1, %v623_v33 }
 0x1d7   : > { %631 = vst.msk [vmem:[#allocation2 + $0x8] sm:$0xff] %vm629_vm1, %v603_v35  ;;  %633 = vst.msk [vmem:[#allocation2 + $0x18] sm:$0xff] %vm629_vm1, %v611_v36 }
 0x1d8   : > { %635 = vst.msk [vmem:[#allocation2 + $0x28] sm:$0xff] %vm629_vm1, %v619_v37  ;;  %637 = vst.msk [vmem:[#allocation2 + $0x38] sm:$0xff] %vm629_vm1, %v627_v38 }
 0x1d9 PF: > { %vm674_vm2 = vcmask 130048   ;;  %v2740_v40 = vld [vmem:[%s3293_s16] sm:$0xff]   ;;  %v2741_v41 = vld [vmem:[%s3293_s16 + $0x8] sm:$0xff]   ;;  %v2742_v43 = vld [vmem:[%s3293_s16 + $0x10] sm:$0xff]   ;;  %s2089_s15 = scalar_lea.sflag [#allocation5], %s301_s23 }
 0x1da   : > { %2453 = vmatprep.mubr.msk.bf16.mxu0 %vm674_vm2, %v2740_v40  ;;  %2463 = vmatprep.mubr.msk.bf16.mxu1 %vm674_vm2, %v2740_v40  ;;  %v2743_v47 = vld [vmem:[%s3293_s16 + $0x18] sm:$0xff]   ;;  %v2744_v51 = vld [vmem:[%s4034_s3] sm:$0xff]  }
 0x1dc   : > { %v646_v39 = vld [vmem:[#allocation2] sm:$0xff]  ;;  %v648_v42 = vld [vmem:[#allocation2 + $0x10] sm:$0xff] }
 0x1dd   : > { %2451 = vmatprep.subr.bf16.mxu0 %v646_v39  ;;  %v650_v46 = vld [vmem:[#allocation2 + $0x20] sm:$0xff]  ;;  %v652_v49 = vld [vmem:[#allocation2 + $0x30] sm:$0xff] }
 0x1de   : > { %2452 = vmatpush3.bf16.msra.mxu0 %v646_v39  ;;  %v647_v44 = vld [vmem:[#allocation2 + $0x8] sm:$0xff]  ;;  %v649_v45 = vld [vmem:[#allocation2 + $0x18] sm:$0xff] }
 0x1df   : > { %2471 = vmatprep.subr.bf16.mxu0 %v648_v42  ;;  %2461 = vmatprep.subr.bf16.mxu1 %v647_v44  ;;  %v651_v48 = vld [vmem:[#allocation2 + $0x28] sm:$0xff]  ;;  %v653_v50 = vld [vmem:[#allocation2 + $0x38] sm:$0xff] }
 0x1e0   : > { %2462 = vmatpush3.bf16.msra.mxu1 %v647_v44 }
 0x1e1   : > { %2454 = vmatmul.mubr.msk.bf16.vlgmr.msra.gmra.mrb[0].mxu0 %vm674_vm2, %v2741_v41  ;;  %2481 = vmatprep.subr.bf16.mxu1 %v649_v45 }
 0x1e2   : > { %2472 = vmatpush3.bf16.msra.mxu0 %v648_v42  ;;  %2457 = vmatprep.mubr.msk.bf16.mxu0 %vm674_vm2, %v2742_v43 }
 0x1e3   : > { %2491 = vmatprep.subr.bf16.mxu0 %v650_v46  ;;  %2464 = vmatmul.mubr.msk.bf16.vlgmr.msra.gmra.mrb[0].mxu1 %vm674_vm2, %v2741_v41 }
 0x1e4   : > { %2482 = vmatpush3.bf16.msra.mxu1 %v649_v45  ;;  %2467 = vmatprep.mubr.msk.bf16.mxu1 %vm674_vm2, %v2742_v43 }
 0x1e5   : > { %2501 = vmatprep.subr.bf16.mxu1 %v651_v48 }
 0x1e9   : > { %2458 = vmatmul.mubr.msk.bf16.gmra.mrb[4].mxu0 %vm674_vm2, %v2743_v47 }
 0x1ea   : > { %2473 = vmatprep.mubr.msk.bf16.mxu0 %vm674_vm2, %v2740_v40 }
 0x1eb   : > { %2468 = vmatmul.mubr.msk.bf16.gmra.mrb[4].mxu1 %vm674_vm2, %v2743_v47 }
 0x1ec   : > { %2483 = vmatprep.mubr.msk.bf16.mxu1 %vm674_vm2, %v2740_v40 }
 0x1f1   : > { %2474 = vmatmul.mubr.msk.bf16.vlgmr.msra.gmra.mrb[8].mxu0 %vm674_vm2, %v2741_v41 }
 0x1f2   : > { %2492 = vmatpush3.bf16.msra.mxu0 %v650_v46  ;;  %2477 = vmatprep.mubr.msk.bf16.mxu0 %vm674_vm2, %v2742_v43 }
 0x1f3   : > { %2511 = vmatprep.subr.bf16.mxu0 %v652_v49  ;;  %2484 = vmatmul.mubr.msk.bf16.vlgmr.msra.gmra.mrb[8].mxu1 %vm674_vm2, %v2741_v41 }
 0x1f4   : > { %2502 = vmatpush3.bf16.msra.mxu1 %v651_v48  ;;  %2487 = vmatprep.mubr.msk.bf16.mxu1 %vm674_vm2, %v2742_v43 }
 0x1f5   : > { %2521 = vmatprep.subr.bf16.mxu1 %v653_v50 }
 0x1f9   : > { %2478 = vmatmul.mubr.msk.bf16.gmra.mrb[12].mxu0 %vm674_vm2, %v2743_v47 }
 0x1fa   : > { %2493 = vmatprep.mubr.msk.bf16.mxu0 %vm674_vm2, %v2740_v40 }
 0x1fb   : > { %2488 = vmatmul.mubr.msk.bf16.gmra.mrb[12].mxu1 %vm674_vm2, %v2743_v47 }
 0x1fc   : > { %2503 = vmatprep.mubr.msk.bf16.mxu1 %vm674_vm2, %v2740_v40 }
 0x201   : > { %2494 = vmatmul.mubr.msk.bf16.vlgmr.msra.gmra.mrb[16].mxu0 %vm674_vm2, %v2741_v41 }
 0x202   : > { %2497 = vmatprep.mubr.msk.bf16.mxu0 %vm674_vm2, %v2742_v43  ;;  %2512 = vmatpush3.bf16.msra.mxu0 %v652_v49 }
 0x203   : > { %2504 = vmatmul.mubr.msk.bf16.vlgmr.msra.gmra.mrb[16].mxu1 %vm674_vm2, %v2741_v41  ;;  %2531 = vmatprep.subr.bf16.mxu0 %v2744_v51 }
 0x204   : > { %2507 = vmatprep.mubr.msk.bf16.mxu1 %vm674_vm2, %v2742_v43  ;;  %2522 = vmatpush3.bf16.msra.mxu1 %v653_v50 }
 0x205   : > { %2605 = vmatprep.subr.bf16.mxu1 %v2744_v51 }
 0x209   : > { %2498 = vmatmul.mubr.msk.bf16.gmra.mrb[20].mxu0 %vm674_vm2, %v2743_v47 }
 0x20a   : > { %2513 = vmatprep.mubr.msk.bf16.mxu0 %vm674_vm2, %v2740_v40 }
 0x20b   : > { %2508 = vmatmul.mubr.msk.bf16.gmra.mrb[20].mxu1 %vm674_vm2, %v2743_v47 }
 0x20c   : > { %2523 = vmatprep.mubr.msk.bf16.mxu1 %vm674_vm2, %v2740_v40 }
 0x211   : > { %2514 = vmatmul.mubr.msk.bf16.vlgmr.msra.gmra.mrb[24].mxu0 %vm674_vm2, %v2741_v41 }
 0x212   : > { %2517 = vmatprep.mubr.msk.bf16.mxu0 %vm674_vm2, %v2742_v43  ;;  %2532 = vmatpush3.bf16.msra.mxu0 %v2744_v51 }
 0x213   : > { %2524 = vmatmul.mubr.msk.bf16.vlgmr.msra.gmra.mrb[24].mxu1 %vm674_vm2, %v2741_v41 }
 0x214   : > { %2527 = vmatprep.mubr.msk.bf16.mxu1 %vm674_vm2, %v2742_v43  ;;  %2606 = vmatpush3.bf16.msra.mxu1 %v2744_v51 }
 0x219   : > { %2518 = vmatmul.mubr.msk.bf16.gmra.mrb[28].mxu0 %vm674_vm2, %v2743_v47 }
 0x21b   : > { %2528 = vmatmul.mubr.msk.bf16.gmra.mrb[28].mxu1 %vm674_vm2, %v2743_v47 }
 0x2b4   : > { %v2455_v52 = vpop.f32.mrb[0].mxu0 }
 0x2b5   : > { %v721_v53 = vpop.f32.mrb[1].mxu0 }
 0x2b6   : > { %v2456_v54 = vpop.f32.mrb[2].mxu0  ;;  %v2465_v58 = vpop.f32.mrb[0].mxu1 }
 0x2b7   : > { %v1208_v55 = vpack.c.bf16 %v2456_v54, %v2455_v52  ;;  %v724_v56 = vpop.f32.mrb[3].mxu0  ;;  %v786_v59 = vpop.f32.mrb[1].mxu1 }
 0x2b8   : > { %v1207_v57 = vpack.c.bf16 %v724_v56, %v721_v53  ;;  %v2466_v60 = vpop.f32.mrb[2].mxu1 }
 0x2b9   : > { %v1212_v62 = vpack.c.bf16 %v2466_v60, %v2465_v58  ;;  %v789_v63 = vpop.f32.mrb[3].mxu1 }
 0x2ba   : > { %2533 = vmatprep.mubr.msk.bf16.mxu0 %vm674_vm2, %v1207_v57  ;;  %v1211_v1 = vpack.c.bf16 %v789_v63, %v786_v59 }
 0x2bb   : > { %2534 = vmatmul.mubr.msk.bf16.vlgmr.msra.gmra.mrb[32].mxu0 %vm674_vm2, %v1208_v55 }
 0x2bc   : > { %v2459_v61 = vpop.f32.mrb[4].mxu0 }
 0x2bd   : > { %v737_v0 = vpop.f32.mrb[5].mxu0 }
 0x2be   : > { %v2460_v2 = vpop.f32.mrb[6].mxu0  ;;  %v2469_v6 = vpop.f32.mrb[4].mxu1 }
 0x2bf   : > { %v1210_v3 = vpack.c.bf16 %v2460_v2, %v2459_v61  ;;  %v740_v4 = vpop.f32.mrb[7].mxu0  ;;  %v802_v7 = vpop.f32.mrb[5].mxu1 }
 0x2c0   : > { %v1209_v5 = vpack.c.bf16 %v740_v4, %v737_v0  ;;  %v2470_v8 = vpop.f32.mrb[6].mxu1 }
 0x2c1   : > { %v1214_v10 = vpack.c.bf16 %v2470_v8, %v2469_v6  ;;  %v805_v11 = vpop.f32.mrb[7].mxu1 }
 0x2c2   : > { %2537 = vmatprep.mubr.msk.bf16.mxu0 %vm674_vm2, %v1209_v5  ;;  %v1213_v13 = vpack.c.bf16 %v805_v11, %v802_v7 }
 0x2c3   : > { %2538 = vmatmul.mubr.msk.bf16.gmra.mrb[36].mxu0 %vm674_vm2, %v1210_v3 }
 0x2c4   : > { %v2475_v9 = vpop.f32.mrb[8].mxu0  ;;  %2541 = vmatprep.mubr.msk.bf16.mxu0 %vm674_vm2, %v1211_v1 }
 0x2c5   : > { %v851_v12 = vpop.f32.mrb[9].mxu0 }
 0x2c6   : > { %v2476_v14 = vpop.f32.mrb[10].mxu0  ;;  %v3360_v18 = vpop.f32.mrb[8].mxu1 }
 0x2c7   : > { %v1216_v15 = vpack.c.bf16 %v2476_v14, %v2475_v9  ;;  %v854_v16 = vpop.f32.mrb[11].mxu0  ;;  %v916_v19 = vpop.f32.mrb[9].mxu1 }
 0x2c8   : > { %v1215_v17 = vpack.c.bf16 %v854_v16, %v851_v12  ;;  %v2486_v20 = vpop.f32.mrb[10].mxu1 }
 0x2c9   : > { %v1220_v22 = vpack.c.bf16 %v2486_v20, %v3360_v18  ;;  %v919_v23 = vpop.f32.mrb[11].mxu1 }
 0x2ca   : > { %v1219_v25 = vpack.c.bf16 %v919_v23, %v916_v19 }
 0x2cb   : > { %2542 = vmatmul.mubr.msk.bf16.gmra.mrb[40].mxu0 %vm674_vm2, %v1212_v62 }
 0x2cc   : > { %v2479_v21 = vpop.f32.mrb[12].mxu0  ;;  %2545 = vmatprep.mubr.msk.bf16.mxu0 %vm674_vm2, %v1213_v13 }
 0x2cd   : > { %v867_v24 = vpop.f32.mrb[13].mxu0 }
 0x2ce   : > { %v2480_v26 = vpop.f32.mrb[14].mxu0  ;;  %v3365_v30 = vpop.f32.mrb[12].mxu1 }
 0x2cf   : > { %v1218_v27 = vpack.c.bf16 %v2480_v26, %v2479_v21  ;;  %v870_v28 = vpop.f32.mrb[15].mxu0  ;;  %v932_v31 = vpop.f32.mrb[13].mxu1 }
 0x2d0   : > { %v1217_v29 = vpack.c.bf16 %v870_v28, %v867_v24  ;;  %v3368_v32 = vpop.f32.mrb[14].mxu1 }
 0x2d1   : > { %v1222_v34 = vpack.c.bf16 %v3368_v32, %v3365_v30  ;;  %v935_v35 = vpop.f32.mrb[15].mxu1 }
 0x2d2   : > { %v1221_v37 = vpack.c.bf16 %v935_v35, %v932_v31 }
 0x2d3   : > { %2546 = vmatmul.mubr.msk.bf16.gmra.mrb[44].mxu0 %vm674_vm2, %v1214_v10 }
 0x2d4   : > { %v2495_v33 = vpop.f32.mrb[16].mxu0  ;;  %2549 = vmatprep.mubr.msk.bf16.mxu0 %vm674_vm2, %v1215_v17 }
 0x2d5   : > { %v981_v36 = vpop.f32.mrb[17].mxu0 }
 0x2d6   : > { %v2496_v38 = vpop.f32.mrb[18].mxu0  ;;  %v2505_v42 = vpop.f32.mrb[16].mxu1 }
 0x2d7   : > { %v1224_v39 = vpack.c.bf16 %v2496_v38, %v2495_v33  ;;  %v984_v40 = vpop.f32.mrb[19].mxu0  ;;  %v1046_v43 = vpop.f32.mrb[17].mxu1 }
 0x2d8   : > { %v1223_v41 = vpack.c.bf16 %v984_v40, %v981_v36  ;;  %v2506_v44 = vpop.f32.mrb[18].mxu1 }
 0x2d9   : > { %v1228_v46 = vpack.c.bf16 %v2506_v44, %v2505_v42  ;;  %v1049_v47 = vpop.f32.mrb[19].mxu1 }
 0x2da   : > { %2565 = vmatprep.mubr.msk.bf16.mxu1 %vm674_vm2, %v1223_v41  ;;  %v1227_v49 = vpack.c.bf16 %v1049_v47, %v1046_v43 }
 0x2db   : > { %2550 = vmatmul.mubr.msk.bf16.gmra.mrb[48].mxu0 %vm674_vm2, %v1216_v15  ;;  %2566 = vmatmul.mubr.msk.bf16.vlgmr.msra.gmra.mrb[32].mxu1 %vm674_vm2, %v1224_v39 }
 0x2dc   : > { %v2499_v45 = vpop.f32.mrb[20].mxu0  ;;  %2553 = vmatprep.mubr.msk.bf16.mxu0 %vm674_vm2, %v1217_v29 }
 0x2dd   : > { %v997_v48 = vpop.f32.mrb[21].mxu0 }
 0x2de   : > { %v2500_v50 = vpop.f32.mrb[22].mxu0  ;;  %v2509_v54 = vpop.f32.mrb[20].mxu1 }
 0x2df   : > { %v1226_v51 = vpack.c.bf16 %v2500_v50, %v2499_v45  ;;  %v1000_v52 = vpop.f32.mrb[23].mxu0  ;;  %v1062_v55 = vpop.f32.mrb[21].mxu1 }
 0x2e0   : > { %v1225_v53 = vpack.c.bf16 %v1000_v52, %v997_v48  ;;  %v2510_v56 = vpop.f32.mrb[22].mxu1 }
 0x2e1   : > { %v1230_v57 = vpack.c.bf16 %v2510_v56, %v2509_v54  ;;  %v1065_v58 = vpop.f32.mrb[23].mxu1 }
 0x2e2   : > { %2569 = vmatprep.mubr.msk.bf16.mxu1 %vm674_vm2, %v1225_v53  ;;  %v1229_v60 = vpack.c.bf16 %v1065_v58, %v1062_v55 }
 0x2e3   : > { %2554 = vmatmul.mubr.msk.bf16.gmra.mrb[52].mxu0 %vm674_vm2, %v1218_v27  ;;  %2570 = vmatmul.mubr.msk.bf16.gmra.mrb[36].mxu1 %vm674_vm2, %v1226_v51 }
 0x2e4   : > { %2557 = vmatprep.mubr.msk.bf16.mxu0 %vm674_vm2, %v1219_v25  ;;  %2573 = vmatprep.mubr.msk.bf16.mxu1 %vm674_vm2, %v1227_v49  ;;  %v2515_v59 = vpop.f32.mrb[24].mxu0 }
 0x2e5   : > { %v1111_v61 = vpop.f32.mrb[25].mxu0 }
 0x2e6   : > { %v2516_v62 = vpop.f32.mrb[26].mxu0  ;;  %v2525_v2 = vpop.f32.mrb[24].mxu1 }
 0x2e7   : > { %v1232_v63 = vpack.c.bf16 %v2516_v62, %v2515_v59  ;;  %v1114_v0 = vpop.f32.mrb[27].mxu0  ;;  %v1176_v3 = vpop.f32.mrb[25].mxu1 }
 0x2e8   : > { %v1231_v1 = vpack.c.bf16 %v1114_v0, %v1111_v61  ;;  %v2526_v4 = vpop.f32.mrb[26].mxu1 }
 0x2e9   : > { %v1236_v6 = vpack.c.bf16 %v2526_v4, %v2525_v2  ;;  %v1179_v7 = vpop.f32.mrb[27].mxu1 }
 0x2ea   : > { %v1235_v9 = vpack.c.bf16 %v1179_v7, %v1176_v3 }
 0x2eb   : > { %2558 = vmatmul.mubr.msk.bf16.gmra.mrb[56].mxu0 %vm674_vm2, %v1220_v22  ;;  %2574 = vmatmul.mubr.msk.bf16.gmra.mrb[40].mxu1 %vm674_vm2, %v1228_v46 }
 0x2ec   : > { %2561 = vmatprep.mubr.msk.bf16.mxu0 %vm674_vm2, %v1221_v37  ;;  %2577 = vmatprep.mubr.msk.bf16.mxu1 %vm674_vm2, %v1229_v60  ;;  %v2519_v5 = vpop.f32.mrb[28].mxu0 }
 0x2ed   : > { %v1127_v8 = vpop.f32.mrb[29].mxu0 }
 0x2ee   : > { %v2520_v10 = vpop.f32.mrb[30].mxu0  ;;  %v2529_v14 = vpop.f32.mrb[28].mxu1 }
 0x2ef   : > { %v1234_v11 = vpack.c.bf16 %v2520_v10, %v2519_v5  ;;  %v1130_v12 = vpop.f32.mrb[31].mxu0  ;;  %v1192_v15 = vpop.f32.mrb[29].mxu1 }
 0x2f0   : > { %v1233_v13 = vpack.c.bf16 %v1130_v12, %v1127_v8  ;;  %v2530_v16 = vpop.f32.mrb[30].mxu1 }
 0x2f1   : > { %v1238_v17 = vpack.c.bf16 %v2530_v16, %v2529_v14  ;;  %v1195_v18 = vpop.f32.mrb[31].mxu1 }
 0x2f2   : > { %v1237_v19 = vpack.c.bf16 %v1195_v18, %v1192_v15 }
 0x2f3   : > { %2562 = vmatmul.mubr.msk.bf16.gmra.mrb[60].mxu0 %vm674_vm2, %v1222_v34  ;;  %2578 = vmatmul.mubr.msk.bf16.gmra.mrb[44].mxu1 %vm674_vm2, %v1230_v57 }
 0x2f4   : > { %2581 = vmatprep.mubr.msk.bf16.mxu1 %vm674_vm2, %v1231_v1 }
 0x2fb   : > { %2582 = vmatmul.mubr.msk.bf16.gmra.mrb[48].mxu1 %vm674_vm2, %v1232_v63 }
 0x2fc   : > { %2585 = vmatprep.mubr.msk.bf16.mxu1 %vm674_vm2, %v1233_v13 }
 0x303   : > { %2586 = vmatmul.mubr.msk.bf16.gmra.mrb[52].mxu1 %vm674_vm2, %v1234_v11 }
 0x304   : > { %2589 = vmatprep.mubr.msk.bf16.mxu1 %vm674_vm2, %v1235_v9 }
 0x30b   : > { %2590 = vmatmul.mubr.msk.bf16.gmra.mrb[56].mxu1 %vm674_vm2, %v1236_v6 }
 0x30c   : > { %2593 = vmatprep.mubr.msk.bf16.mxu1 %vm674_vm2, %v1237_v19 }
 0x313   : > { %2594 = vmatmul.mubr.msk.bf16.gmra.mrb[60].mxu1 %vm674_vm2, %v1238_v17 }
 0x38e   : > { %v3396_v20 = vpop.f32.mrb[32].mxu0 }
 0x38f   : > { %4123 = vst [vmem:[#allocation21_spill] sm:$0xff] %v3396_v20  ;;  %v3398_v21 = vpop.f32.mrb[33].mxu0 }
 0x390   : > { %v3400_v22 = vpop.f32.mrb[34].mxu0 }
 0x391   : > { %v3402_v23 = vpop.f32.mrb[35].mxu0 }
 0x392   : > { %4124 = vst [vmem:[#allocation22_spill] sm:$0xff] %v3402_v23 }
 0x396   : > { %v3404_v24 = vpop.f32.mrb[36].mxu0 }
 0x397   : > { %v3406_v25 = vpop.f32.mrb[37].mxu0 }
 0x398   : > { %v3408_v26 = vpop.f32.mrb[38].mxu0 }
 0x399   : > { %4125 = vst [vmem:[#allocation23_spill] sm:$0xff] %v3408_v26  ;;  %v3410_v27 = vpop.f32.mrb[39].mxu0 }
 0x39a   : > { %4126 = vst [vmem:[#allocation24_spill] sm:$0xff] %v3410_v27 }
 0x39e   : > { %v3412_v28 = vpop.f32.mrb[40].mxu0 }
 0x39f   : > { %4127 = vst [vmem:[#allocation25_spill] sm:$0xff] %v3412_v28  ;;  %v1646_v29 = vmax.f32 %v3396_v20, %v3412_v28  ;;  %v3416_v30 = vpop.f32.mrb[41].mxu0 }
 0x3a0   : > { %4128 = vst [vmem:[#allocation26_spill] sm:$0xff] %v3416_v30  ;;  %v1632_v31 = vmax.f32 %v3398_v21, %v3416_v30  ;;  %v3420_v32 = vpop.f32.mrb[42].mxu0 }
 0x3a1   : > { %v1653_v33 = vmax.f32 %v3400_v22, %v3420_v32  ;;  %v3424_v34 = vpop.f32.mrb[43].mxu0 }
 0x3a2   : > { %4129 = vst [vmem:[#allocation27_spill] sm:$0xff] %v3424_v34  ;;  %v1639_v35 = vmax.f32 %v3402_v23, %v3424_v34 }
 0x3a6   : > { %v3428_v36 = vpop.f32.mrb[44].mxu0 }
 0x3a7   : > { %v1674_v37 = vmax.f32 %v3404_v24, %v3428_v36  ;;  %v3432_v38 = vpop.f32.mrb[45].mxu0 }
 0x3a8   : > { %v1660_v39 = vmax.f32 %v3406_v25, %v3432_v38  ;;  %v3436_v40 = vpop.f32.mrb[46].mxu0 }
 0x3a9   : > { %4130 = vst [vmem:[#allocation28_spill] sm:$0xff] %v3436_v40  ;;  %v1681_v41 = vmax.f32 %v3408_v26, %v3436_v40  ;;  %v3440_v42 = vpop.f32.mrb[47].mxu0 }
 0x3aa   : > { %4131 = vst [vmem:[#allocation29_spill] sm:$0xff] %v3440_v42  ;;  %v1667_v43 = vmax.f32 %v3410_v27, %v3440_v42 }
 0x3ae   : > { %v3444_v44 = vpop.f32.mrb[48].mxu0  ;;  %v3446_v45 = vpop.f32.mrb[32].mxu1 }
 0x3af   : > { %4132 = vst [vmem:[#allocation30_spill] sm:$0xff] %v3444_v44  ;;  %4133 = vst [vmem:[#allocation31_spill] sm:$0xff] %v3446_v45  ;;  %v1647_v46 = vmax.f32 %v1646_v29, %v3444_v44  ;;  %v3449_v47 = vpop.f32.mrb[49].mxu0  ;;  %v3451_v48 = vpop.f32.mrb[33].mxu1 }
 0x3b0   : > { %4134 = vst [vmem:[#allocation32_spill] sm:$0xff] %v3449_v47  ;;  %4135 = vst [vmem:[#allocation33_spill] sm:$0xff] %v3451_v48  ;;  %v1633_v49 = vmax.f32 %v1632_v31, %v3449_v47  ;;  %v3454_v50 = vpop.f32.mrb[50].mxu0  ;;  %v3456_v51 = vpop.f32.mrb[34].mxu1 }
 0x3b1   : > { %4136 = vst [vmem:[#allocation34_spill] sm:$0xff] %v3454_v50  ;;  %4137 = vst [vmem:[#allocation35_spill] sm:$0xff] %v3456_v51  ;;  %v1654_v52 = vmax.f32 %v1653_v33, %v3454_v50  ;;  %v3459_v53 = vpop.f32.mrb[51].mxu0  ;;  %v3461_v54 = vpop.f32.mrb[35].mxu1 }
 0x3b2   : > { %4138 = vst [vmem:[#allocation36_spill] sm:$0xff] %v3459_v53  ;;  %4139 = vst [vmem:[#allocation37_spill] sm:$0xff] %v3461_v54  ;;  %v1640_v55 = vmax.f32 %v1639_v35, %v3459_v53 }
 0x3b6   : > { %v3464_v56 = vpop.f32.mrb[52].mxu0  ;;  %v3466_v57 = vpop.f32.mrb[36].mxu1 }
 0x3b7   : > { %4140 = vst [vmem:[#allocation38_spill] sm:$0xff] %v3466_v57  ;;  %v1675_v58 = vmax.f32 %v1674_v37, %v3464_v56  ;;  %v3469_v59 = vpop.f32.mrb[53].mxu0  ;;  %v3471_v60 = vpop.f32.mrb[37].mxu1 }
 0x3b8   : > { %v1661_v61 = vmax.f32 %v1660_v39, %v3469_v59  ;;  %v3474_v62 = vpop.f32.mrb[54].mxu0  ;;  %v3476_v63 = vpop.f32.mrb[38].mxu1 }
 0x3b9   : > { %4141 = vst [vmem:[#allocation39_spill] sm:$0xff] %v3474_v62  ;;  %4142 = vst [vmem:[#allocation40_spill] sm:$0xff] %v3476_v63  ;;  %v1682_v0 = vmax.f32 %v1681_v41, %v3474_v62  ;;  %v3479_v1 = vpop.f32.mrb[55].mxu0  ;;  %v3481_v2 = vpop.f32.mrb[39].mxu1 }
 0x3ba   : > { %4143 = vst [vmem:[#allocation41_spill] sm:$0xff] %v3479_v1  ;;  %4144 = vst [vmem:[#allocation42_spill] sm:$0xff] %v3481_v2  ;;  %v1668_v3 = vmax.f32 %v1667_v43, %v3479_v1 }
 0x3be   : > { %v3484_v4 = vpop.f32.mrb[56].mxu0  ;;  %v3486_v5 = vpop.f32.mrb[40].mxu1 }
 0x3bf   : > { %4145 = vst [vmem:[#allocation43_spill] sm:$0xff] %v3484_v4  ;;  %4146 = vst [vmem:[#allocation44_spill] sm:$0xff] %v3486_v5  ;;  %v1648_v6 = vmax.f32 %v1647_v46, %v3484_v4  ;;  %v3489_v7 = vpop.f32.mrb[57].mxu0  ;;  %v3491_v8 = vpop.f32.mrb[41].mxu1 }
 0x3c0   : > { %4147 = vst [vmem:[#allocation45_spill] sm:$0xff] %v3489_v7  ;;  %4148 = vst [vmem:[#allocation46_spill] sm:$0xff] %v3491_v8  ;;  %v1634_v9 = vmax.f32 %v1633_v49, %v3489_v7  ;;  %v3494_v10 = vpop.f32.mrb[58].mxu0  ;;  %v3496_v11 = vpop.f32.mrb[42].mxu1 }
 0x3c1   : > { %4149 = vst [vmem:[#allocation47_spill] sm:$0xff] %v3494_v10  ;;  %4150 = vst [vmem:[#allocation48_spill] sm:$0xff] %v3496_v11  ;;  %v1649_v12 = vmax.f32 %v1648_v6, %v3446_v45  ;;  %v1655_v13 = vmax.f32 %v1654_v52, %v3494_v10  ;;  %v3500_v14 = vpop.f32.mrb[59].mxu0  ;;  %v3502_v15 = vpop.f32.mrb[43].mxu1 }
 0x3c2   : > { %4151 = vst [vmem:[#allocation49_spill] sm:$0xff] %v3500_v14  ;;  %4152 = vst [vmem:[#allocation50_spill] sm:$0xff] %v3502_v15  ;;  %v1635_v16 = vmax.f32 %v1634_v9, %v3451_v48  ;;  %v1641_v17 = vmax.f32 %v1640_v55, %v3500_v14 }
 0x3c3   : > { %v1650_v18 = vmax.f32 %v1649_v12, %v3486_v5  ;;  %v1656_v19 = vmax.f32 %v1655_v13, %v3456_v51 }
 0x3c4   : > { %v1636_v29 = vmax.f32 %v1635_v16, %v3491_v8  ;;  %v1642_v31 = vmax.f32 %v1641_v17, %v3461_v54 }
 0x3c5   : > { %v1657_v33 = vmax.f32 %v1656_v19, %v3496_v11 }
 0x3c6   : > { %v1643_v35 = vmax.f32 %v1642_v31, %v3502_v15  ;;  %v3512_v37 = vpop.f32.mrb[60].mxu0  ;;  %v3514_v39 = vpop.f32.mrb[44].mxu1 }
 0x3c7   : > { %4153 = vst [vmem:[#allocation51_spill] sm:$0xff] %v3514_v39  ;;  %v1676_v41 = vmax.f32 %v1675_v58, %v3512_v37  ;;  %v3517_v43 = vpop.f32.mrb[61].mxu0  ;;  %v3519_v46 = vpop.f32.mrb[45].mxu1 }
 0x3c8   : > { %v1662_v49 = vmax.f32 %v1661_v61, %v3517_v43  ;;  %v3522_v52 = vpop.f32.mrb[62].mxu0  ;;  %v3524_v55 = vpop.f32.mrb[46].mxu1 }
 0x3c9   : > { %4154 = vst [vmem:[#allocation52_spill] sm:$0xff] %v3522_v52  ;;  %4155 = vst [vmem:[#allocation53_spill] sm:$0xff] %v3524_v55  ;;  %v1677_v6 = vmax.f32 %v1676_v41, %v3466_v57  ;;  %v1683_v9 = vmax.f32 %v1682_v0, %v3522_v52  ;;  %v3528_v12 = vpop.f32.mrb[63].mxu0  ;;  %v3530_v13 = vpop.f32.mrb[47].mxu1 }
 0x3ca   : > { %4156 = vst [vmem:[#allocation54_spill] sm:$0xff] %v3528_v12  ;;  %4157 = vst [vmem:[#allocation55_spill] sm:$0xff] %v3530_v13  ;;  %v1663_v58 = vmax.f32 %v1662_v49, %v3471_v60  ;;  %v1669_v16 = vmax.f32 %v1668_v3, %v3528_v12 }
 0x3cb   : > { %v1678_v17 = vmax.f32 %v1677_v6, %v3514_v39  ;;  %v1684_v61 = vmax.f32 %v1683_v9, %v3476_v63 }
 0x3cc   : > { %v1664_v19 = vmax.f32 %v1663_v58, %v3519_v46  ;;  %v1670_v31 = vmax.f32 %v1669_v16, %v3481_v2 }
 0x3cd   : > { %v1685_v41 = vmax.f32 %v1684_v61, %v3524_v55 }
 0x3ce   : > { %v1671_v0 = vmax.f32 %v1670_v31, %v3530_v13  ;;  %v3540_v1 = vpop.f32.mrb[48].mxu1 }
 0x3cf   : > { %v1651_v42 = vmax.f32 %v1650_v18, %v3540_v1  ;;  %v3543_v27 = vpop.f32.mrb[49].mxu1 }
 0x3d0   : > { %4158 = vst [vmem:[#allocation56_spill] sm:$0xff] %v3543_v27  ;;  %v1637_v3 = vmax.f32 %v1636_v29, %v3543_v27  ;;  %v3546_v49 = vpop.f32.mrb[50].mxu1 }
 0x3d1   : > { %v1658_v6 = vmax.f32 %v1657_v33, %v3546_v49  ;;  %v3549_v9 = vpop.f32.mrb[51].mxu1 }
 0x3d2   : > { %4159 = vst [vmem:[#allocation57_spill] sm:$0xff] %v3549_v9  ;;  %v1644_v58 = vmax.f32 %v1643_v35, %v3549_v9 }
 0x3d6   : > { %v3552_v16 = vpop.f32.mrb[52].mxu1 }
 0x3d7   : > { %v1679_v61 = vmax.f32 %v1678_v17, %v3552_v16  ;;  %v3555_v31 = vpop.f32.mrb[53].mxu1 }
 0x3d8   : > { %4160 = vst [vmem:[#allocation58_spill] sm:$0xff] %v3555_v31  ;;  %v1665_v18 = vmax.f32 %v1664_v19, %v3555_v31  ;;  %v3558_v13 = vpop.f32.mrb[54].mxu1 }
 0x3d9   : > { %4161 = vst [vmem:[#allocation59_spill] sm:$0xff] %v3558_v13  ;;  %v1686_v29 = vmax.f32 %v1685_v41, %v3558_v13  ;;  %v3561_v2 = vpop.f32.mrb[55].mxu1 }
 0x3da   : > { %4162 = vst [vmem:[#allocation60_spill] sm:$0xff] %v3561_v2  ;;  %v3564_v33 = vmax.f32 %v1671_v0, %v3561_v2 }
 0x3dc   : > { %4163 = vst [vmem:[#allocation61_spill] sm:$0xff] %v3564_v33 }
 0x3de   : > { %v3566_v12 = vpop.f32.mrb[56].mxu1 }
 0x3df   : > { %4164 = vst [vmem:[#allocation62_spill] sm:$0xff] %v3566_v12  ;;  %v3569_v35 = vmax.f32 %v1651_v42, %v3566_v12  ;;  %v3571_v55 = vpop.f32.mrb[57].mxu1 }
 0x3e0   : > { %4165 = vst [vmem:[#allocation63_spill] sm:$0xff] %v3571_v55  ;;  %v3574_v17 = vmax.f32 %v1637_v3, %v3571_v55  ;;  %v3576_v19 = vpop.f32.mrb[58].mxu1 }
 0x3e1   : > { %4166 = vst [vmem:[#allocation64_spill] sm:$0xff] %v3576_v19  ;;  %v1690_v41 = vsub.f32 %v3396_v20, %v3569_v35  ;;  %v1698_v13 = vsub.f32 %v3412_v28, %v3569_v35  ;;  %v1706_v0 = vsub.f32 %v3444_v44, %v3569_v35  ;;  %v1714_v42 = vsub.f32 %v3484_v4, %v3569_v35  ;;  %v3586_v2 = vpop.f32.mrb[59].mxu1 }
 0x3e2   : > { %v1722_v3 = vsub.f32 %v3446_v45, %v3569_v35  ;;  %v1730_v33 = vsub.f32 %v3486_v5, %v3569_v35  ;;  %v1738_v20 = vsub.f32 %v3540_v1, %v3569_v35  ;;  %v1746_v28 = vsub.f32 %v3566_v12, %v3569_v35 }
 0x3e3   : > { %v1756_v63 = vmul.f32 1.442695, %v1690_v41  ;;  %v1772_v52 = vmul.f32 1.442695, %v1698_v13  ;;  %v1788_v44 = vmul.f32 1.442695, %v1706_v0  ;;  %v1688_v4 = vsub.f32 %v3398_v21, %v3574_v17 }
 0x3e4   : > { %v1804_v62 = vmul.f32 1.442695, %v1714_v42  ;;  %v1696_v40 = vsub.f32 %v3416_v30, %v3574_v17  ;;  %v1820_v45 = vmul.f32 1.442695, %v1722_v3  ;;  %v1836_v26 = vmul.f32 1.442695, %v1730_v33 }
 0x3e5   : > { %2745 = vpow2.f32 %v1756_v63  ;;  %v1704_v5 = vsub.f32 %v3449_v47, %v3574_v17  ;;  %v1712_v12 = vsub.f32 %v3489_v7, %v3574_v17  ;;  %v1720_v13 = vsub.f32 %v3451_v48, %v3574_v17 }
 0x3e6   : > { %2747 = vpow2.f32 %v1772_v52  ;;  %v1728_v41 = vsub.f32 %v3491_v8, %v3574_v17  ;;  %v3608_v0 = vpop.f32.mrb[60].mxu1  ;;  %v1852_v42 = vmul.f32 1.442695, %v1738_v20  ;;  %v1736_v63 = vsub.f32 %v3543_v27, %v3574_v17 }
 0x3e7   : > { %2749 = vpow2.f32 %v1788_v44  ;;  %v1744_v33 = vsub.f32 %v3571_v55, %v3574_v17  ;;  %v3614_v52 = vpop.f32.mrb[61].mxu1  ;;  %v1868_v3 = vmul.f32 1.442695, %v1746_v28  ;;  %v1752_v7 = vmul.f32 1.442695, %v1688_v4 }
 0x3e8   : > { %2751 = vpow2.f32 %v1804_v62  ;;  %v1768_v48 = vmul.f32 1.442695, %v1696_v40  ;;  %v1784_v47 = vmul.f32 1.442695, %v1704_v5  ;;  %v1800_v30 = vmul.f32 1.442695, %v1712_v12 }
 0x3e9   : > { %2753 = vpow2.f32 %v1820_v45  ;;  %v1816_v8 = vmul.f32 1.442695, %v1720_v13  ;;  %v3617_v44 = vmax.f32 %v1658_v6, %v3576_v19  ;;  %v3620_v20 = vmax.f32 %v1644_v58, %v3586_v2  ;;  %v3622_v27 = vpop.f32.mrb[62].mxu1 }
 0x3ea   : > { %2755 = vpow2.f32 %v1836_v26  ;;  %v3625_v55 = vmax.f32 %v1679_v61, %v3608_v0  ;;  %v3628_v28 = vmax.f32 %v1665_v18, %v3614_v52  ;;  %v3631_v40 = vmax.f32 %v1686_v29, %v3622_v27  ;;  %v3633_v26 = vpop.f32.mrb[63].mxu1 }
 0x3eb   : > { %2757 = vpow2.f32 %v1852_v42  ;;  %v1691_v45 = vsub.f32 %v3400_v22, %v3617_v44  ;;  %v1699_v62 = vsub.f32 %v3420_v32, %v3617_v44  ;;  %v1707_v4 = vsub.f32 %v3454_v50, %v3617_v44 }
 0x3ec   : > { %2759 = vpow2.f32 %v1868_v3  ;;  %v1715_v5 = vsub.f32 %v3494_v10, %v3617_v44  ;;  %v1723_v12 = vsub.f32 %v3456_v51, %v3617_v44  ;;  %v1731_v6 = vsub.f32 %v3496_v11, %v3617_v44 }
 0x3ed   : > { %2761 = vpow2.f32 %v1752_v7  ;;  %v1832_v58 = vmul.f32 1.442695, %v1728_v41  ;;  %v1739_v61 = vsub.f32 %v3546_v49, %v3617_v44  ;;  %v1747_v18 = vsub.f32 %v3576_v19, %v3617_v44 }
 0x3ee   : > { %2763 = vpow2.f32 %v1768_v48  ;;  %v1848_v7 = vmul.f32 1.442695, %v1736_v63  ;;  %v1864_v42 = vmul.f32 1.442695, %v1744_v33  ;;  %v1758_v3 = vmul.f32 1.442695, %v1691_v45 }
 0x3ef   : > { %v2746_v29 = vpop.eup %2745  ;;  %2765 = vpow2.f32 %v1784_v47  ;;  %v1774_v10 = vmul.f32 1.442695, %v1699_v62  ;;  %v1790_v11 = vmul.f32 1.442695, %v1707_v4  ;;  %v1689_v48 = vsub.f32 %v3402_v23, %v3620_v20 }
 0x3f0   : > { %v2748_v13 = vpop.eup %2747  ;;  %2767 = vpow2.f32 %v1800_v30  ;;  %v1697_v19 = vsub.f32 %v3424_v34, %v3620_v20  ;;  %v1705_v47 = vsub.f32 %v3459_v53, %v3620_v20  ;;  %v1713_v30 = vsub.f32 %v3500_v14, %v3620_v20 }
 0x3f1   : > { %v2750_v51 = vpop.eup %2749  ;;  %v1894_v50 = vadd.f32 %v2748_v13, %v2746_v29  ;;  %2769 = vpow2.f32 %v1816_v8  ;;  %v1721_v8 = vsub.f32 %v3461_v54, %v3620_v20  ;;  %v1729_v45 = vsub.f32 %v3502_v15, %v3620_v20 }
 0x3f2   : > { %v2752_v41 = vpop.eup %2751  ;;  %2771 = vpow2.f32 %v1832_v58  ;;  %v1806_v4 = vmul.f32 1.442695, %v1715_v5  ;;  %v1737_v58 = vsub.f32 %v3549_v9, %v3620_v20  ;;  %v1854_v54 = vmul.f32 1.442695, %v1739_v61 }
 0x3f3   : > { %v2754_v63 = vpop.eup %2753  ;;  %v1895_v33 = vadd.f32 %v2750_v51, %v1894_v50  ;;  %2773 = vpow2.f32 %v1848_v7  ;;  %v1822_v50 = vmul.f32 1.442695, %v1723_v12  ;;  %v1838_v7 = vmul.f32 1.442695, %v1731_v6 }
 0x3f4   : > { %v2756_v62 = vpop.eup %2755  ;;  %2775 = vpow2.f32 %v1864_v42  ;;  %v1870_v53 = vmul.f32 1.442695, %v1747_v18  ;;  %v1754_v42 = vmul.f32 1.442695, %v1689_v48  ;;  %v1770_v5 = vmul.f32 1.442695, %v1697_v19 }
 0x3f5   : > { %v2758_v13 = vpop.eup %2757  ;;  %v1896_v14 = vadd.f32 %v2752_v41, %v1895_v33  ;;  %2777 = vpow2.f32 %v1758_v3  ;;  %v1694_v9 = vsub.f32 %v3404_v24, %v3625_v55  ;;  %v1702_v41 = vsub.f32 %v3428_v36, %v3625_v55 }
 0x3f6   : > { %v2760_v51 = vpop.eup %2759  ;;  %2779 = vpow2.f32 %v1774_v10  ;;  %v1710_v12 = vsub.f32 %v3464_v56, %v3625_v55  ;;  %v1726_v19 = vsub.f32 %v3466_v57, %v3625_v55  ;;  %v1734_v18 = vsub.f32 %v3514_v39, %v3625_v55 }
 0x3f7   : > { %v2762_v34 = vpop.eup %2761  ;;  %v1897_v15 = vadd.f32 %v2754_v63, %v1896_v14  ;;  %2781 = vpow2.f32 %v1790_v11  ;;  %v1718_v11 = vsub.f32 %v3512_v37, %v3625_v55  ;;  %v1802_v29 = vmul.f32 1.442695, %v1713_v30 }
 0x3f8   : > { %v2764_v23 = vpop.eup %2763  ;;  %2783 = vpow2.f32 %v1806_v4  ;;  %v1818_v39 = vmul.f32 1.442695, %v1721_v8  ;;  %v1834_v57 = vmul.f32 1.442695, %v1729_v45  ;;  %v1716_v30 = vsub.f32 %v3517_v43, %v3628_v28 }
 0x3f9   : > { %v2766_v10 = vpop.eup %2765  ;;  %v1898_v6 = vadd.f32 %v2756_v62, %v1897_v15  ;;  %v1880_v61 = vadd.f32 %v2764_v23, %v2762_v34  ;;  %2785 = vpow2.f32 %v1822_v50  ;;  %v1750_v23 = vsub.f32 %v3608_v0, %v3625_v55 }
 0x3fa   : > { %v2768_v14 = vpop.eup %2767  ;;  %2787 = vpow2.f32 %v1838_v7  ;;  %v1786_v15 = vmul.f32 1.442695, %v1705_v47  ;;  %v1708_v47 = vsub.f32 %v3469_v59, %v3628_v28 }
 0x3fb   : > { %v2770_v48 = vpop.eup %2769  ;;  %v1899_v63 = vadd.f32 %v2758_v13, %v1898_v6  ;;  %v1881_v33 = vadd.f32 %v2766_v10, %v1880_v61  ;;  %2789 = vpow2.f32 %v1854_v54  ;;  %v1850_v10 = vmul.f32 1.442695, %v1737_v58 }
 0x3fc   : > { %v2772_v34 = vpop.eup %2771  ;;  %2791 = vpow2.f32 %v1870_v53  ;;  %v1692_v54 = vsub.f32 %v3406_v25, %v3628_v28  ;;  %v1700_v53 = vsub.f32 %v3432_v38, %v3628_v28  ;;  %v1812_v61 = vmul.f32 1.442695, %v1718_v11  ;;  %v4172_v11 = vld [vmem:[#allocation40_spill] sm:$0xff] }
 0x3fd   : > { %v2774_v62 = vpop.eup %2773  ;;  %v1900_v4 = vadd.f32 %v2760_v51, %v1899_v63  ;;  %v1882_v50 = vadd.f32 %v2768_v14, %v1881_v33  ;;  %2793 = vpow2.f32 %v1754_v42  ;;  %v1764_v42 = vmul.f32 1.442695, %v1694_v9 }
 0x3fe   : > { %v2776_v7 = vpop.eup %2775  ;;  %2795 = vpow2.f32 %v1770_v5  ;;  %v4167_v9 = vsub.f32 %v3586_v2, %v3620_v20  ;;  %v1844_v58 = vmul.f32 1.442695, %v1734_v18 }
 0x3ff   : > { %v2778_v3 = vpop.eup %2777  ;;  %2797 = vlog2.f32 %v1900_v4  ;;  %v1883_v13 = vadd.f32 %v2770_v48, %v1882_v50  ;;  %v1828_v48 = vmul.f32 1.442695, %v1726_v19  ;;  %v4197_v19 = vld [vmem:[#allocation56_spill] sm:$0xff] }
 0x400   : > { %v2780_v6 = vpop.eup %2779  ;;  %2799 = vpow2.f32 %v1786_v15 }
 0x401   : > { %v2782_v8 = vpop.eup %2781  ;;  %v1884_v45 = vadd.f32 %v2772_v34, %v1883_v13  ;;  %v1901_v51 = vadd.f32 %v2780_v6, %v2778_v3  ;;  %2801 = vpow2.f32 %v1802_v29  ;;  %v1866_v34 = vmul.f32 1.442695, %v4167_v9 }
 0x402   : > { %v2784_v5 = vpop.eup %2783  ;;  %2803 = vpow2.f32 %v1818_v39  ;;  %v1780_v29 = vmul.f32 1.442695, %v1702_v41  ;;  %v1796_v6 = vmul.f32 1.442695, %v1710_v12  ;;  %v4171_v12 = vld [vmem:[#allocation52_spill] sm:$0xff] }
 0x403   : > { %v2786_v63 = vpop.eup %2785  ;;  %v1885_v33 = vadd.f32 %v2774_v62, %v1884_v45  ;;  %v1902_v15 = vadd.f32 %v2782_v8, %v1901_v51  ;;  %2805 = vpow2.f32 %v1834_v57  ;;  %v4168_v57 = vld [vmem:[#allocation23_spill] sm:$0xff]  ;;  %v4169_v45 = vld [vmem:[#allocation28_spill] sm:$0xff] }
 0x404   : > { %v2788_v3 = vpop.eup %2787  ;;  %2807 = vpow2.f32 %v1850_v10  ;;  %v4182_v10 = vld [vmem:[#allocation62_spill] sm:$0xff]  ;;  %v4198_v8 = vld [vmem:[#allocation63_spill] sm:$0xff] }
 0x405   : > { %v2790_v4 = vpop.eup %2789  ;;  %v1886_v50 = vadd.f32 %v2776_v7, %v1885_v33  ;;  %v1903_v13 = vadd.f32 %v2784_v5, %v1902_v15  ;;  %2809 = vpow2.f32 %v1764_v42  ;;  %v4170_v7 = vld [vmem:[#allocation39_spill] sm:$0xff]  ;;  %v4173_v33 = vld [vmem:[#allocation53_spill] sm:$0xff] }
 0x406   : > { %v2792_v14 = vpop.eup %2791 }
 0x407   : > { %v2794_v62 = vpop.eup %2793  ;;  %2811 = vlog2.f32 %v1886_v50  ;;  %v1904_v39 = vadd.f32 %v2786_v63, %v1903_v13 }
 0x408   : > { %v2796_v41 = vpop.eup %2795  ;;  %2813 = vpow2.f32 %v1780_v29  ;;  %v4174_v29 = vld [vmem:[#allocation59_spill] sm:$0xff] }
 0x409   : > { %v2798_v18 = vpop.eup %2797  ;;  %v1905_v5 = vadd.f32 %v2788_v3, %v1904_v39  ;;  %2815 = vpow2.f32 %v1866_v34  ;;  %v1887_v63 = vadd.f32 %v2796_v41, %v2794_v62  ;;  %v4175_v3 = vsub.f32 %v3552_v16, %v3625_v55 }
 0x40a   : > { %v2800_v9 = vpop.eup %2799  ;;  %v1941_v50 = vmul.f32 0.6931472, %v2798_v18  ;;  %2817 = vpow2.f32 %v1796_v6  ;;  %v1876_v6 = vmul.f32 1.442695, %v1750_v23  ;;  %v1760_v41 = vmul.f32 1.442695, %v1692_v54 }
 0x40b   : > { %v1906_v42 = vadd.f32 %v2790_v4, %v1905_v5  ;;  %v1888_v51 = vadd.f32 %v2800_v9, %v1887_v63  ;;  %2819 = vpow2.f32 %v1812_v61  ;;  %v1860_v34 = vmul.f32 1.442695, %v4175_v3  ;;  %v2802_v62 = vpop.eup %2801  ;;  %v4177_v63 = vld [vmem:[#allocation25_spill] sm:$0xff]  ;;  %v4179_v54 = vld [vmem:[#allocation43_spill] sm:$0xff] }
 0x40c   : > { %v1954_v39 = vadd.f32 %v1941_v50, %v3569_v35  ;;  %2821 = vpow2.f32 %v1828_v48  ;;  %v2804_v18 = vpop.eup %2803  ;;  %v1776_v61 = vmul.f32 1.442695, %v1700_v53  ;;  %v4176_v35 = vld [vmem:[#allocation21_spill] sm:$0xff]  ;;  %v4178_v50 = vld [vmem:[#allocation30_spill] sm:$0xff] }
 0x40d   : > { %v1907_v13 = vadd.f32 %v2792_v14, %v1906_v42  ;;  %v1889_v4 = vadd.f32 %v2802_v62, %v1888_v51  ;;  %2823 = vpow2.f32 %v1844_v58  ;;  %v2806_v5 = vpop.eup %2805  ;;  %v4180_v42 = vld [vmem:[#allocation31_spill] sm:$0xff]  ;;  %v4181_v58 = vld [vmem:[#allocation44_spill] sm:$0xff] }
 0x40e   : > { %v1962_v48 = vsub.f32 %v4176_v35, %v1954_v39  ;;  %v1970_v9 = vsub.f32 %v4177_v63, %v1954_v39  ;;  %v1978_v23 = vsub.f32 %v4178_v50, %v1954_v39  ;;  %v1986_v3 = vsub.f32 %v4179_v54, %v1954_v39  ;;  %v2808_v14 = vpop.eup %2807 }
 0x40f   : > { %v1994_v51 = vsub.f32 %v4180_v42, %v1954_v39  ;;  %v2002_v62 = vsub.f32 %v4181_v58, %v1954_v39  ;;  %v2010_v53 = vsub.f32 %v3540_v1, %v1954_v39  ;;  %v2018_v15 = vsub.f32 %v4182_v10, %v1954_v39  ;;  %v2810_v35 = vpop.eup %2809  ;;  %v4188_v58 = vld [vmem:[#allocation29_spill] sm:$0xff] }
 0x410   : > { %2026 = vst [vmem:[%s3295_s20 + $0x10] sm:$0xff] %v1962_v48  ;;  %2034 = vst [vmem:[%s3295_s20 + $0x50] sm:$0xff] %v1970_v9  ;;  %2825 = vlog2.f32 %v1907_v13  ;;  %v1890_v63 = vadd.f32 %v2804_v18, %v1889_v4  ;;  %v1792_v50 = vmul.f32 1.442695, %v1708_v47  ;;  %v1808_v54 = vmul.f32 1.442695, %v1716_v30 }
 0x411   : > { %2042 = vst [vmem:[%s3295_s20 + $0x90] sm:$0xff] %v1978_v23  ;;  %2050 = vst [vmem:[%s3295_s20 + $0xd0] sm:$0xff] %v1986_v3  ;;  %v2812_v42 = vpop.eup %2811  ;;  %2827 = vpow2.f32 %v1860_v34  ;;  %v4183_v1 = vsub.f32 %v3471_v60, %v3628_v28  ;;  %v4184_v13 = vsub.f32 %v3519_v46, %v3628_v28  ;;  %v4185_v47 = vld [vmem:[#allocation61_spill] sm:$0xff]  ;;  %v4187_v3 = vld [vmem:[#allocation24_spill] sm:$0xff] }
 0x412   : > { %2058 = vst [vmem:[%s3295_s20 + $0x110] sm:$0xff] %v1994_v51  ;;  %2066 = vst [vmem:[%s3295_s20 + $0x150] sm:$0xff] %v2002_v62  ;;  %v3758_v18 = vmax.f32 %v4185_v47, %v3633_v26  ;;  %v2814_v4 = vpop.eup %2813  ;;  %v1937_v30 = vmul.f32 0.6931472, %v2812_v42  ;;  %v1891_v48 = vadd.f32 %v2806_v5, %v1890_v63  ;;  %2829 = vpow2.f32 %v1760_v41  ;;  %v4189_v41 = vld [vmem:[#allocation41_spill] sm:$0xff]  ;;  %v4191_v47 = vld [vmem:[#allocation42_spill] sm:$0xff] }
 0x413   : > { %2074 = vst [vmem:[%s3295_s20 + $0x190] sm:$0xff] %v2010_v53  ;;  %2082 = vst [vmem:[%s3295_s20 + $0x1d0] sm:$0xff] %v2018_v15  ;;  %v1824_v10 = vmul.f32 1.442695, %v4183_v1  ;;  %v1840_v39 = vmul.f32 1.442695, %v4184_v13  ;;  %v4186_v15 = vsub.f32 %v3555_v31, %v3628_v28  ;;  %v2816_v9 = vpop.eup %2815  ;;  %v1922_v23 = vadd.f32 %v2814_v4, %v2810_v35 }
 0x414   : > { %2831 = vpow2.f32 %v1776_v61  ;;  %v2818_v53 = vpop.eup %2817  ;;  %v1952_v1 = vadd.f32 %v1937_v30, %v3574_v17  ;;  %v1892_v13 = vadd.f32 %v2808_v14, %v1891_v48  ;;  %v4190_v61 = vld [vmem:[#allocation54_spill] sm:$0xff]  ;;  %v4193_v30 = vld [vmem:[#allocation32_spill] sm:$0xff]  ;;  %v4194_v5 = vld [vmem:[#allocation45_spill] sm:$0xff] }
 0x415   : > { %v1856_v34 = vmul.f32 1.442695, %v4186_v15  ;;  %2833 = vpow2.f32 %v1876_v6  ;;  %v2820_v63 = vpop.eup %2819  ;;  %v1923_v42 = vadd.f32 %v2818_v53, %v1922_v23  ;;  %v4192_v6 = vld [vmem:[#allocation26_spill] sm:$0xff]  ;;  %v4195_v53 = vld [vmem:[#allocation33_spill] sm:$0xff] }
 0x416   : > { %2835 = vpow2.f32 %v1792_v50  ;;  %v2822_v15 = vpop.eup %2821  ;;  %v1960_v17 = vsub.f32 %v3398_v21, %v1952_v1  ;;  %v1968_v14 = vsub.f32 %v4192_v6, %v1952_v1  ;;  %v1976_v48 = vsub.f32 %v4193_v30, %v1952_v1  ;;  %v4196_v35 = vld [vmem:[#allocation46_spill] sm:$0xff] }
 0x417   : > { %v1984_v23 = vsub.f32 %v4194_v5, %v1952_v1  ;;  %v2824_v50 = vpop.eup %2823  ;;  %v1992_v62 = vsub.f32 %v4195_v53, %v1952_v1  ;;  %v2000_v51 = vsub.f32 %v4196_v35, %v1952_v1  ;;  %v2008_v4 = vsub.f32 %v4197_v19, %v1952_v1  ;;  %v4199_v5 = vld [vmem:[#allocation55_spill] sm:$0xff] }
 0x418   : > { %v2016_v31 = vsub.f32 %v4198_v8, %v1952_v1  ;;  %2024 = vst [vmem:[%s3295_s20] sm:$0xff] %v1960_v17  ;;  %2032 = vst [vmem:[%s3295_s20 + $0x40] sm:$0xff] %v1968_v14  ;;  %v1893_v21 = vadd.f32 %v2816_v9, %v1892_v13  ;;  %v1924_v6 = vadd.f32 %v2820_v63, %v1923_v42  ;;  %2837 = vpow2.f32 %v1808_v54  ;;  %v4201_v8 = vld [vmem:[#allocation60_spill] sm:$0xff] }
 0x419   : > { %2040 = vst [vmem:[%s3295_s20 + $0x80] sm:$0xff] %v1976_v48  ;;  %2048 = vst [vmem:[%s3295_s20 + $0xc0] sm:$0xff] %v1984_v23  ;;  %v1733_v30 = vsub.f32 %v4199_v5, %v3758_v18  ;;  %2839 = vpow2.f32 %v1824_v10  ;;  %v4200_v19 = vsub.f32 %v4168_v57, %v3631_v40  ;;  %v1741_v1 = vsub.f32 %v4201_v8, %v3758_v18 }
 0x41a   : > { %2056 = vst [vmem:[%s3295_s20 + $0x100] sm:$0xff] %v1992_v62  ;;  %2064 = vst [vmem:[%s3295_s20 + $0x140] sm:$0xff] %v2000_v51  ;;  %v1749_v9 = vsub.f32 %v3633_v26, %v3758_v18  ;;  %v2826_v13 = vpop.eup %2825  ;;  %2841 = vlog2.f32 %v1893_v21  ;;  %v1925_v54 = vadd.f32 %v2822_v15, %v1924_v6  ;;  %v4202_v62 = vsub.f32 %v4169_v45, %v3631_v40 }
 0x41b   : > { %2072 = vst [vmem:[%s3295_s20 + $0x180] sm:$0xff] %v2008_v4  ;;  %2080 = vst [vmem:[%s3295_s20 + $0x1c0] sm:$0xff] %v2016_v31  ;;  %v1766_v35 = vmul.f32 1.442695, %v4200_v19  ;;  %v2828_v63 = vpop.eup %2827  ;;  %v1943_v31 = vmul.f32 0.6931472, %v2826_v13  ;;  %2843 = vpow2.f32 %v1840_v39  ;;  %v4203_v14 = vsub.f32 %v3614_v52, %v3628_v28 }
 0x41c   : > { %v1782_v51 = vmul.f32 1.442695, %v4202_v62  ;;  %v2830_v10 = vpop.eup %2829  ;;  %v1926_v42 = vadd.f32 %v2824_v50, %v1925_v54  ;;  %2845 = vpow2.f32 %v1856_v34  ;;  %v4204_v15 = vsub.f32 %v4170_v7, %v3631_v40  ;;  %v4207_v54 = vld [vmem:[#allocation47_spill] sm:$0xff] }
 0x41d   : > { %v1955_v17 = vadd.f32 %v1943_v31, %v3617_v44  ;;  %v1872_v48 = vmul.f32 1.442695, %v4203_v14  ;;  %2847 = vpow2.f32 %v1766_v35  ;;  %v4205_v44 = vsub.f32 %v4171_v12, %v3631_v40  ;;  %v4206_v35 = vld [vmem:[#allocation34_spill] sm:$0xff]  ;;  %v4208_v31 = vld [vmem:[#allocation35_spill] sm:$0xff] }
 0x41e   : > { %v2832_v4 = vpop.eup %2831  ;;  %v1798_v23 = vmul.f32 1.442695, %v4204_v15  ;;  %v1927_v39 = vadd.f32 %v2828_v63, %v1926_v42  ;;  %2849 = vpow2.f32 %v1782_v51  ;;  %v4211_v15 = vsub.f32 %v4172_v11, %v3631_v40 }
 0x41f   : > { %v2834_v53 = vpop.eup %2833  ;;  %v1908_v50 = vadd.f32 %v2832_v4, %v2830_v10  ;;  %v1814_v34 = vmul.f32 1.442695, %v4205_v44  ;;  %v1963_v6 = vsub.f32 %v3400_v22, %v1955_v17  ;;  %v1971_v19 = vsub.f32 %v3420_v32, %v1955_v17  ;;  %v4209_v10 = vld [vmem:[#allocation48_spill] sm:$0xff] }
 0x420   : > { %v2836_v21 = vpop.eup %2835  ;;  %v1979_v13 = vsub.f32 %v4206_v35, %v1955_v17  ;;  %v1987_v62 = vsub.f32 %v4207_v54, %v1955_v17  ;;  %v1995_v63 = vsub.f32 %v4208_v31, %v1955_v17  ;;  %v2003_v51 = vsub.f32 %v4209_v10, %v1955_v17  ;;  %v4210_v4 = vld [vmem:[#allocation64_spill] sm:$0xff] }
 0x421   : > { %v2011_v42 = vsub.f32 %v3546_v49, %v1955_v17  ;;  %v2019_v14 = vsub.f32 %v4210_v4, %v1955_v17  ;;  %2027 = vst [vmem:[%s3295_s20 + $0x18] sm:$0xff] %v1963_v6  ;;  %2035 = vst [vmem:[%s3295_s20 + $0x58] sm:$0xff] %v1971_v19  ;;  %v1928_v22 = vadd.f32 %v2834_v53, %v1927_v39  ;;  %2851 = vpow2.f32 %v1872_v48 }
 0x422   : > { %2043 = vst [vmem:[%s3295_s20 + $0x98] sm:$0xff] %v1979_v13  ;;  %2051 = vst [vmem:[%s3295_s20 + $0xd8] sm:$0xff] %v1987_v62  ;;  %v1909_v32 = vadd.f32 %v2836_v21, %v1908_v50  ;;  %v1830_v44 = vmul.f32 1.442695, %v4211_v15  ;;  %v2838_v35 = vpop.eup %2837  ;;  %2853 = vpow2.f32 %v1798_v23  ;;  %v4212_v49 = vsub.f32 %v4173_v33, %v3631_v40 }
 0x423   : > { %2059 = vst [vmem:[%s3295_s20 + $0x118] sm:$0xff] %v1995_v63  ;;  %2067 = vst [vmem:[%s3295_s20 + $0x158] sm:$0xff] %v2003_v51  ;;  %v2840_v6 = vpop.eup %2839  ;;  %2855 = vlog2.f32 %v1928_v22  ;;  %v4213_v48 = vsub.f32 %v4174_v29, %v3631_v40  ;;  %v4214_v50 = vsub.f32 %v4187_v3, %v3758_v18  ;;  %v4215_v51 = vsub.f32 %v4188_v58, %v3758_v18 }
 0x424   : > { %2075 = vst [vmem:[%s3295_s20 + $0x198] sm:$0xff] %v2011_v42  ;;  %2083 = vst [vmem:[%s3295_s20 + $0x1d8] sm:$0xff] %v2019_v14  ;;  %v1846_v17 = vmul.f32 1.442695, %v4212_v49  ;;  %v1910_v19 = vadd.f32 %v2838_v35, %v1909_v32  ;;  %v2842_v39 = vpop.eup %2841  ;;  %2857 = vpow2.f32 %v1814_v34  ;;  %v4216_v4 = vsub.f32 %v3622_v27, %v3631_v40  ;;  %v4220_v49 = vld [vmem:[#allocation27_spill] sm:$0xff] }
 0x425   : > { %v1862_v53 = vmul.f32 1.442695, %v4213_v48  ;;  %v1762_v21 = vmul.f32 1.442695, %v4214_v50  ;;  %v2844_v13 = vpop.eup %2843  ;;  %v1939_v54 = vmul.f32 0.6931472, %v2842_v39  ;;  %2859 = vpow2.f32 %v1830_v44 }
 0x426   : > { %v1911_v23 = vadd.f32 %v2840_v6, %v1910_v19  ;;  %v2846_v62 = vpop.eup %2845  ;;  %2861 = vpow2.f32 %v1846_v17  ;;  %v1778_v34 = vmul.f32 1.442695, %v4215_v51  ;;  %v1878_v14 = vmul.f32 1.442695, %v4216_v4  ;;  %v4219_v44 = vld [vmem:[#allocation22_spill] sm:$0xff]  ;;  %v4221_v6 = vld [vmem:[#allocation36_spill] sm:$0xff] }
 0x427   : > { %v2848_v31 = vpop.eup %2847  ;;  %v1953_v63 = vadd.f32 %v1939_v54, %v3620_v20  ;;  %2863 = vpow2.f32 %v1862_v53  ;;  %v4217_v22 = vsub.f32 %v4189_v41, %v3758_v18  ;;  %v4218_v32 = vsub.f32 %v4190_v61, %v3758_v18  ;;  %v4222_v48 = vld [vmem:[#allocation49_spill] sm:$0xff] }
 0x428   : > { %v1912_v10 = vadd.f32 %v2844_v13, %v1911_v23  ;;  %v2850_v42 = vpop.eup %2849  ;;  %2865 = vpow2.f32 %v1762_v21  ;;  %v4223_v39 = vld [vmem:[#allocation37_spill] sm:$0xff]  ;;  %v4224_v21 = vld [vmem:[#allocation50_spill] sm:$0xff] }
 0x429   : > { %v1794_v20 = vmul.f32 1.442695, %v4217_v22  ;;  %v1810_v15 = vmul.f32 1.442695, %v4218_v32  ;;  %v1961_v35 = vsub.f32 %v4219_v44, %v1953_v63  ;;  %v1969_v17 = vsub.f32 %v4220_v49, %v1953_v63  ;;  %v4225_v54 = vld [vmem:[#allocation57_spill] sm:$0xff] }
 0x42a   : > { %v1977_v19 = vsub.f32 %v4221_v6, %v1953_v63  ;;  %v1985_v53 = vsub.f32 %v4222_v48, %v1953_v63  ;;  %v1993_v50 = vsub.f32 %v4223_v39, %v1953_v63  ;;  %v2001_v13 = vsub.f32 %v4224_v21, %v1953_v63  ;;  %v4227_v21 = vld [vmem:[#allocation38_spill] sm:$0xff] }
 0x42b   : > { %v2009_v23 = vsub.f32 %v4225_v54, %v1953_v63  ;;  %v2017_v51 = vsub.f32 %v3586_v2, %v1953_v63  ;;  %v2852_v4 = vpop.eup %2851  ;;  %2025 = vst [vmem:[%s3295_s20 + $0x8] sm:$0xff] %v1961_v35  ;;  %2033 = vst [vmem:[%s3295_s20 + $0x48] sm:$0xff] %v1969_v17  ;;  %v1913_v22 = vadd.f32 %v2846_v62, %v1912_v10  ;;  %2867 = vpow2.f32 %v1778_v34 }
 0x42c   : > { %2041 = vst [vmem:[%s3295_s20 + $0x88] sm:$0xff] %v1977_v19  ;;  %2049 = vst [vmem:[%s3295_s20 + $0xc8] sm:$0xff] %v1985_v53  ;;  %v1929_v32 = vadd.f32 %v2850_v42, %v2848_v31  ;;  %v2854_v44 = vpop.eup %2853  ;;  %2869 = vpow2.f32 %v1878_v14  ;;  %v4226_v2 = vsub.f32 %v4191_v47, %v3758_v18 }
 0x42d   : > { %2057 = vst [vmem:[%s3295_s20 + $0x108] sm:$0xff] %v1993_v50  ;;  %2065 = vst [vmem:[%s3295_s20 + $0x148] sm:$0xff] %v2001_v13  ;;  %v2856_v49 = vpop.eup %2855  ;;  %v1914_v6 = vadd.f32 %v2852_v4, %v1913_v22  ;;  %2871 = vpow2.f32 %v1794_v20  ;;  %v1842_v20 = vmul.f32 1.442695, %v1733_v30  ;;  %v4228_v30 = vld [vmem:[#allocation51_spill] sm:$0xff] }
 0x42e   : > { %2073 = vst [vmem:[%s3295_s20 + $0x188] sm:$0xff] %v2009_v23  ;;  %2081 = vst [vmem:[%s3295_s20 + $0x1c8] sm:$0xff] %v2017_v51  ;;  %v1930_v48 = vadd.f32 %v2854_v44, %v1929_v32  ;;  %v1826_v63 = vmul.f32 1.442695, %v4226_v2  ;;  %v2858_v35 = vpop.eup %2857  ;;  %v1949_v17 = vmul.f32 0.6931472, %v2856_v49  ;;  %2873 = vpow2.f32 %v1810_v15 }
 0x42f   : > { %v2860_v62 = vpop.eup %2859  ;;  %2875 = vlog2.f32 %v1914_v6  ;;  %v1858_v15 = vmul.f32 1.442695, %v1741_v1 }
 0x430   : > { %v1931_v31 = vadd.f32 %v2858_v35, %v1930_v48  ;;  %v2862_v10 = vpop.eup %2861  ;;  %v1958_v34 = vadd.f32 %v1949_v17, %v3625_v55  ;;  %2877 = vpow2.f32 %v1826_v63 }
 0x431   : > { %v2864_v42 = vpop.eup %2863  ;;  %2879 = vpow2.f32 %v1842_v20 }
 0x432   : > { %v1932_v14 = vadd.f32 %v2860_v62, %v1931_v31  ;;  %v2866_v19 = vpop.eup %2865  ;;  %v1966_v53 = vsub.f32 %v3404_v24, %v1958_v34  ;;  %v1974_v55 = vsub.f32 %v3428_v36, %v1958_v34  ;;  %v1982_v39 = vsub.f32 %v3464_v56, %v1958_v34 }
 0x433   : > { %v1990_v50 = vsub.f32 %v3512_v37, %v1958_v34  ;;  %v1998_v13 = vsub.f32 %v4227_v21, %v1958_v34  ;;  %v2006_v54 = vsub.f32 %v4228_v30, %v1958_v34  ;;  %v2014_v23 = vsub.f32 %v3552_v16, %v1958_v34 }
 0x434   : > { %v2022_v1 = vsub.f32 %v3608_v0, %v1958_v34  ;;  %2030 = vst [vmem:[%s3295_s20 + $0x30] sm:$0xff] %v1966_v53  ;;  %2038 = vst [vmem:[%s3295_s20 + $0x70] sm:$0xff] %v1974_v55  ;;  %v1933_v24 = vadd.f32 %v2862_v10, %v1932_v14  ;;  %v1874_v36 = vmul.f32 1.442695, %v1749_v9  ;;  %2881 = vpow2.f32 %v1858_v15 }
 0x435   : > { %2046 = vst [vmem:[%s3295_s20 + $0xb0] sm:$0xff] %v1982_v39  ;;  %2054 = vst [vmem:[%s3295_s20 + $0xf0] sm:$0xff] %v1990_v50  ;;  %v2868_v51 = vpop.eup %2867 }
 0x436   : > { %2062 = vst [vmem:[%s3295_s20 + $0x130] sm:$0xff] %v1998_v13  ;;  %2070 = vst [vmem:[%s3295_s20 + $0x170] sm:$0xff] %v2006_v54  ;;  %v2870_v56 = vpop.eup %2869  ;;  %v1934_v37 = vadd.f32 %v2864_v42, %v1933_v24  ;;  %v1915_v16 = vadd.f32 %v2868_v51, %v2866_v19  ;;  %2883 = vpow2.f32 %v1874_v36  ;;  %v4229_v42 = vld [vmem:[#allocation58_spill] sm:$0xff] }
 0x437   : > { %2078 = vst [vmem:[%s3295_s20 + $0x1b0] sm:$0xff] %v2014_v23  ;;  %2086 = vst [vmem:[%s3295_s20 + $0x1f0] sm:$0xff] %v2022_v1  ;;  %v2872_v4 = vpop.eup %2871 }
 0x438   : > { %v2874_v0 = vpop.eup %2873  ;;  %v1935_v22 = vadd.f32 %v2870_v56, %v1934_v37  ;;  %v1916_v32 = vadd.f32 %v2872_v4, %v1915_v16 }
 0x439   : > { %v2876_v44 = vpop.eup %2875 }
 0x43a   : > { %v1945_v49 = vmul.f32 0.6931472, %v2876_v44  ;;  %2885 = vlog2.f32 %v1935_v22  ;;  %v1917_v6 = vadd.f32 %v2874_v0, %v1916_v32  ;;  %v2878_v48 = vpop.eup %2877 }
 0x43b   : > { %v2880_v31 = vpop.eup %2879 }
 0x43c   : > { %v1956_v9 = vadd.f32 %v1945_v49, %v3628_v28  ;;  %v1918_v2 = vadd.f32 %v2878_v48, %v1917_v6 }
 0x43e   : > { %v1964_v63 = vsub.f32 %v3406_v25, %v1956_v9  ;;  %v1972_v35 = vsub.f32 %v3432_v38, %v1956_v9  ;;  %v1980_v17 = vsub.f32 %v3469_v59, %v1956_v9  ;;  %v1988_v62 = vsub.f32 %v3517_v43, %v1956_v9  ;;  %v2882_v38 = vpop.eup %2881 }
 0x43f   : > { %v1996_v10 = vsub.f32 %v3471_v60, %v1956_v9  ;;  %v2004_v34 = vsub.f32 %v3519_v46, %v1956_v9  ;;  %v2012_v28 = vsub.f32 %v4229_v42, %v1956_v9  ;;  %v2020_v14 = vsub.f32 %v3614_v52, %v1956_v9 }
 0x440   : > { %2028 = vst [vmem:[%s3295_s20 + $0x20] sm:$0xff] %v1964_v63  ;;  %2036 = vst [vmem:[%s3295_s20 + $0x60] sm:$0xff] %v1972_v35  ;;  %v1919_v25 = vadd.f32 %v2880_v31, %v1918_v2  ;;  %v2884_v60 = vpop.eup %2883 }
 0x441   : > { %2044 = vst [vmem:[%s3295_s20 + $0xa0] sm:$0xff] %v1980_v17  ;;  %2052 = vst [vmem:[%s3295_s20 + $0xe0] sm:$0xff] %v1988_v62 }
 0x442   : > { %2060 = vst [vmem:[%s3295_s20 + $0x120] sm:$0xff] %v1996_v10  ;;  %2068 = vst [vmem:[%s3295_s20 + $0x160] sm:$0xff] %v2004_v34  ;;  %v1920_v59 = vadd.f32 %v2882_v38, %v1919_v25 }
 0x443   : > { %2076 = vst [vmem:[%s3295_s20 + $0x1a0] sm:$0xff] %v2012_v28  ;;  %2084 = vst [vmem:[%s3295_s20 + $0x1e0] sm:$0xff] %v2020_v14 }
 0x444   : > { %v2886_v43 = vpop.eup %2885  ;;  %v1921_v46 = vadd.f32 %v2884_v60, %v1920_v59 }
 0x445   : > { %v1951_v52 = vmul.f32 0.6931472, %v2886_v43 }
 0x446   : > { %2887 = vlog2.f32 %v1921_v46 }
 0x447   : > { %v1959_v20 = vadd.f32 %v1951_v52, %v3631_v40 }
 0x449   : > { %v1967_v15 = vsub.f32 %v4168_v57, %v1959_v20  ;;  %v1975_v19 = vsub.f32 %v4169_v45, %v1959_v20  ;;  %v1983_v53 = vsub.f32 %v4170_v7, %v1959_v20  ;;  %v1991_v55 = vsub.f32 %v4171_v12, %v1959_v20 }
 0x44a   : > { %v1999_v39 = vsub.f32 %v4172_v11, %v1959_v20  ;;  %v2007_v50 = vsub.f32 %v4173_v33, %v1959_v20  ;;  %v2015_v21 = vsub.f32 %v4174_v29, %v1959_v20  ;;  %v2023_v13 = vsub.f32 %v3622_v27, %v1959_v20 }
 0x44b   : > { %2031 = vst [vmem:[%s3295_s20 + $0x38] sm:$0xff] %v1967_v15  ;;  %2039 = vst [vmem:[%s3295_s20 + $0x78] sm:$0xff] %v1975_v19 }
 0x44c   : > { %2047 = vst [vmem:[%s3295_s20 + $0xb8] sm:$0xff] %v1983_v53  ;;  %2055 = vst [vmem:[%s3295_s20 + $0xf8] sm:$0xff] %v1991_v55 }
 0x44d   : > { %2063 = vst [vmem:[%s3295_s20 + $0x138] sm:$0xff] %v1999_v39  ;;  %2071 = vst [vmem:[%s3295_s20 + $0x178] sm:$0xff] %v2007_v50 }
 0x44e   : > { %2079 = vst [vmem:[%s3295_s20 + $0x1b8] sm:$0xff] %v2015_v21  ;;  %2087 = vst [vmem:[%s3295_s20 + $0x1f8] sm:$0xff] %v2023_v13 }
 0x450   : > { %v2888_v40 = vpop.eup %2887 }
 0x451   : > { %v1947_v57 = vmul.f32 0.6931472, %v2888_v40 }
 0x453   : > { %v1957_v45 = vadd.f32 %v1947_v57, %v3758_v18 }
 0x455   : > { %v1965_v27 = vsub.f32 %v4187_v3, %v1957_v45  ;;  %v1973_v7 = vsub.f32 %v4188_v58, %v1957_v45  ;;  %v1981_v12 = vsub.f32 %v4189_v41, %v1957_v45  ;;  %v1989_v11 = vsub.f32 %v4190_v61, %v1957_v45 }
 0x456   : > { %v1997_v33 = vsub.f32 %v4191_v47, %v1957_v45  ;;  %v2005_v29 = vsub.f32 %v4199_v5, %v1957_v45  ;;  %v2013_v30 = vsub.f32 %v4201_v8, %v1957_v45  ;;  %v2021_v54 = vsub.f32 %v3633_v26, %v1957_v45 }
 0x457   : > { %2029 = vst [vmem:[%s3295_s20 + $0x28] sm:$0xff] %v1965_v27  ;;  %2037 = vst [vmem:[%s3295_s20 + $0x68] sm:$0xff] %v1973_v7 }
 0x458   : > { %2045 = vst [vmem:[%s3295_s20 + $0xa8] sm:$0xff] %v1981_v12  ;;  %2053 = vst [vmem:[%s3295_s20 + $0xe8] sm:$0xff] %v1989_v11 }
 0x459   : > { %2061 = vst [vmem:[%s3295_s20 + $0x128] sm:$0xff] %v1997_v33  ;;  %2069 = vst [vmem:[%s3295_s20 + $0x168] sm:$0xff] %v2005_v29 }
 0x45a   : > { %2077 = vst [vmem:[%s3295_s20 + $0x1a8] sm:$0xff] %v2013_v30  ;;  %2085 = vst [vmem:[%s3295_s20 + $0x1e8] sm:$0xff] %v2021_v54 }
 0x45b   : > { %s2370_s13 = sshll.u32 %s3033_s28, 7  ;;  %s2125_s12 = sshll.u32 %s3295_s20, 4  ;;  %s2126_s12 = int_to_ptr.vmem [resolvable:$true] %s2125_s12 }
 0x45c   : > { %s2106_s29 = sadd.s32 %s2370_s13, %s3286_s10  ;;  %s3061_s18 = smov 1024  }
 0x45d   : > { %s2371_s27 = sshll.u32 %s2106_s29, 7  ;;  %p4230_p2 = scmp.ne.s32.totalorder %s4112_s19, 0 }
 0x45e   : > { %s2108_s23 = scalar_lea.hbm %s4036_s5, %s2371_s27  ;;  %s3062_s17 = smov 2048  }
 0x45f   : > { %2609 = sst [smem:[#allocation10]] (%p4230_p2), %s3061_s18  ;;  %s3063_s1 = smov 8  }
 0x460   : > { %2610 = sst [smem:[#allocation10 + $0x1]] (%p4230_p2), %s3062_s17  ;;  %s3064_s2 = smov 128  }
 0x461   : > { %2611 = sst [smem:[#allocation10 + $0x2]] (%p4230_p2), %s3063_s1  ;;  %s3065_s10 = smov [#allocation9]  }
 0x462   : > { %2612 = sst [smem:[#allocation10 + $0x3]] (%p4230_p2), %s3064_s2  ;;  %s3066_s20 = smov 0  }
 0x463   : > { %2613 = sst [smem:[#allocation10 + $0x4]] (%p4230_p2), %s3064_s2  ;;  %s2377_s13 = sshll.u32 %s3033_s28, 8 }
 0x464   : > { %2614 = sst [smem:[#allocation10 + $0x5]] (%p4230_p2), %s3063_s1  ;;  %s2155_s29 = sshll.u32 %s3297_s0, 4  ;;  %s2156_s29 = int_to_ptr.vmem [resolvable:$true] %s2155_s29 }
 0x465   : > { %2615 = dma.general (%p4230_p2), %s2126_s12, 8192, %s2108_s23, %s2089_s15, %s3065_s10, [#allocation10], %s3066_s20, 0  }
 0x466   : > { %s2153_s30 = scalar_lea.hbm %s4037_s6, %s2377_s13  ;;  %s2919_s16 = scalar_lea.vmem %s2156_s29, 256 }
 0x467   : > { %p2920_p1 = scmp.ne.s32.totalorder %s2156_s29, %s2919_s16  ;;  %p4231_p13 = scmp.ne.s32.totalorder %s4115_s11, 0 }
 0x468   : > { %s3067_s1 = smov [#allocation7]  }
 0x469   : > { %p2921_p8 = pnand %p2920_p1, %p4231_p13  ;;  %s2923_s2 = sshll.u32 %s3067_s1, 4  ;;  %s2924_s2 = int_to_ptr.vmem [resolvable:$false] %s2923_s2 }
 0x46a   : > { %s2925_s19 = scalar_lea.vmem %s2924_s2, 512  ;;  %p2926_p11 = scmp.lt.s32.totalorder %s2156_s29, %s2924_s2 }
 0x46b   : > { %p2922_p9 = pneg %p2921_p8  ;;  %p2927_p3 = scmp.lt.s32.totalorder %s2925_s19, %s2919_s16 }
 0x46d   : > { %p2928_p0 = por %p2927_p3, %p2926_p11 }
 0x46f   : > { %p2929_p4 = pnand %p2928_p0, %p2922_p9 }
 0x471   : > { %2932 = shalt.err (!%p2929_p4)
}
 0x472   : > { %s2933_s0 = scalar_lea.hbm %s2153_s30, 256  ;;  %s2937_s12 = scalar_lea.hbm %s4037_s6, 512 }
 0x473   : > { %p2934_p5 = scmp.ne.s32.totalorder %s2153_s30, %s2933_s0  ;;  %p2938_p12 = scmp.lt.u32.totalorder %s2153_s30, %s4037_s6 }
 0x474   : > { %p2939_p7 = scmp.lt.u32.totalorder %s2937_s12, %s2933_s0  ;;  %p2941_p1 = scmp.lt.u32.totalorder %s2933_s0, %s2153_s30 }
 0x475   : > { %p2935_p6 = pnand %p2934_p5, %p4231_p13 }
 0x476   : > { %p2940_p2 = por %p2939_p7, %p2938_p12 }
 0x477   : > { %p2936_p10 = pneg %p2935_p6 }
 0x478   : > { %p2942_p8 = por %p2941_p1, %p2940_p2 }
 0x47a   : > { %p2943_p9 = pnand %p2942_p8, %p2936_p10 }
 0x47c   : > { %2946 = shalt.err (!%p2943_p9)
}
 0x47d   : > { %s4232_s10 = scalar_lea.sflag [#allocation8], %s3273_s9 }
 0x47e   : > { %2616 = dma.vmem_to_hbm [thread:$0]  (%p4231_p13), %s2156_s29, 256, %s2153_s30, %s4232_s10  }
 0x47f PF: > { %p2631_p11 = scmp.ge.s32.totalorder %s3045_s7, 2  ;;  %s2167_s20 = sand.u32 1, %s3005_s21  }
 0x480   : > { %p4233_p3 = scmp.ne.s32.totalorder %s4116_s8, 0  ;;  %s2168_s13 = scalar_lea.sflag [#allocation5], %s2167_s20 }
 0x482   : > { %p2624_p0 = pnand %p2631_p11, %p4233_p3 }
 0x484   : > { %2996 = dma.done.wait (!%p2624_p0), %s2168_s13, 8192  }
 0x485   : > { %2998 = vsyncadd (!%p2624_p0), %s2168_s13, 4294959104  ;;  %s2176_s17 = sand.u32 1, %s3017_s24   ;;  %p4234_p4 = scmp.ne.s32.totalorder %s4117_s14, 0 }
 0x486   : > { %s2177_s11 = scalar_lea.sflag [#allocation8], %s2176_s17 }
 0x487   : > { %p2627_p5 = pnand %p2631_p11, %p4234_p4 }
 0x489   : > { %3000 = dma.done.wait (!%p2627_p5), %s2177_s11, 256  }
 0x48a   : > { %3002 = vsyncadd (!%p2627_p5), %s2177_s11, 4294967040  ;;  %s26_s7 = sadd.s32 1, %s3045_s7   ;;  %s4235_s9 = sld [smem:[#allocation14_spill]] }
 0x48b   : > { %p23_p13 = scmp.ge.s32.totalorder %s26_s7, 6   ;;  %s4236_s23 = sld [smem:[#allocation20_spill]] }
 0x48c   : > { %s4237_s8 = sld [smem:[#allocation19_spill]]  ;;  %s4238_s27 = sld [smem:[#allocation15_spill]] }
 0x48d   : > { %s4239_s28 = sld [smem:[#allocation16_spill]]  ;;  %s4240_s29 = sld [smem:[#allocation17_spill]] }
 0x48e   : > { %s4241_s30 = sld [smem:[#allocation18_spill]]  ;;  %s4242_s21 = smov %s3009_s22 }
 0x48f   : > { %s4244_s24 = smov %s3021_s25  ;;  %s4245_s25 = smov %s3025_s26 }
 0x490   : > { %s4243_s22 = smov %s4235_s9  ;;  %25 = sbr.rel (!%p23_p13) target bundleno = 15 (0xf), region = 114 }
 0x492   : > { %s4246_s26 = smov %s4237_s8 }
 0x497   :  { %2182 = vsyncpa [#allocation4], 1 }
 0x498   :  { %2184 = vsyncpa [#allocation4 + $0x1], 1 }
 0x499   :  { %2185 = vsyncpa [#allocation5], 1 }
 0x49a   :  { %2187 = vsyncpa [#allocation5 + $0x1], 1 }
 0x49b   :  { %2188 = vsyncpa [#allocation8], 1 }
 0x49c   :  { %2190 = vsyncpa [#allocation8 + $0x1], 1 }

</bundles_post_ra>
